<compile_context>
chip_gen: v5e
topology: v5e:2x2
jax: 0.10.0
libtpu: 0.0.40
codegen_flags: <defaults>
</compile_context>

<pallas_src>
import functools

import jax
import jax.numpy as jnp
from jax.experimental import pallas as pl
from jax.experimental.pallas import tpu as pltpu


# ----------------------------- chip-aware defaults ----------------------------

def _chip_defaults():
    """Returns (scoped VMEM budget bytes, Cout tile) for the local chip."""
    vmem_cap = 64 * 1024 * 1024          # safe floor (v7x per-core VMEM)
    cout_tile = 256                      # v6e/v7x: 256-wide MXU
    try:
        info = pltpu.get_tpu_info()
        vmem_cap = int(getattr(info, "vmem_capacity_bytes", vmem_cap))
    except Exception:
        pass
    try:
        kind = jax.devices()[0].device_kind.lower()
        # <=v5 MXUs are 128x128: a 256-lane output tile only doubles VMEM and
        # result-FIFO pressure with no MXU gain.
        if any(t in kind for t in ("v2", "v3", "v4", "v5")):
            cout_tile = 128
    except Exception:
        pass
    return (vmem_cap * 3) // 4, cout_tile


_VMEM_LIMIT, _COUT_TILE = _chip_defaults()
_FOLD_BATCH_HW = 32     # fold the batch into matmul M when H*W <= this


# ------------------------------- Pallas kernels --------------------------------

def _conv_body(x_ref, w_ref, b_ref, xpad_ref, *, hoist_pad):
    """f32 (NB, H, W, TC) = conv3x3(x, w) + b via 9 per-tap MXU matmuls.

    x_ref:    (NB, H, W, Cin)      bf16, unpadded
    w_ref:    (9, Cin, TC)         bf16, tap-major (tap = kh*3 + kw)
    b_ref:    (1, TC)              f32
    xpad_ref: (NB, H+2, W+2, Cin)  bf16 VMEM scratch (padded plane)
    """
    NB, H, W, Cin = x_ref.shape
    TC = w_ref.shape[-1]
    M = NB * H * W

    def fill_pad():
        # Zero halo + interior copy; no lane/sublane concatenates.
        xpad_ref[...] = jnp.zeros_like(xpad_ref)
        xpad_ref[:, 1:H + 1, 1:W + 1, :] = x_ref[...]

    if hoist_pad:
        # cout-tile axis is innermost and "arbitrary": build the padded plane
        # once per image block, reuse across all cout tiles.
        pl.when(pl.program_id(1) == 0)(fill_pad)
    else:
        fill_pad()

    acc = jnp.zeros((M, TC), jnp.float32)
    for kh in range(3):
        for kw in range(3):
            tap = xpad_ref[:, kh:kh + H, kw:kw + W, :].reshape(M, Cin)
            acc = acc + jnp.dot(tap, w_ref[kh * 3 + kw],
                                preferred_element_type=jnp.float32)
    acc = acc + b_ref[...]                        # (1, TC) broadcast
    return acc.reshape(NB, H, W, TC)


def _conv_relu_kernel(x_ref, w_ref, b_ref, o_ref, xpad_ref, *, pool, hoist_pad):
    """conv3x3 + ReLU (+ fused 2x2 maxpool); bf16 output."""
    y = jnp.maximum(_conv_body(x_ref, w_ref, b_ref, xpad_ref,
                               hoist_pad=hoist_pad), 0.0)
    if pool:
        NB, H, W, TC = y.shape
        # Two pairwise reductions: the H split only reindexes whole (W, C)
        # tiles (layout-free); the W split is the single sublane-axis step.
        y = jnp.max(y.reshape(NB, H // 2, 2, W, TC), axis=2)
        y = jnp.max(y.reshape(NB, H // 2, W // 2, 2, TC), axis=3)
    o_ref[...] = y.astype(o_ref.dtype)


def _conv_dual_kernel(x_ref, w_ref, b_ref, o_pre_ref, o_post_ref, xpad_ref, *,
                      hoist_pad):
    """Chosen layers: pre-ReLU feature (f32) + post-ReLU activation (bf16)."""
    y = _conv_body(x_ref, w_ref, b_ref, xpad_ref, hoist_pad=hoist_pad)
    o_pre_ref[...] = y.astype(o_pre_ref.dtype)
    o_post_ref[...] = jnp.maximum(y, 0.0).astype(o_post_ref.dtype)


def _conv_pre_kernel(x_ref, w_ref, b_ref, o_ref, xpad_ref, *, hoist_pad):
    """Last chosen layer: f32 conv output only (no ReLU applied afterwards)."""
    y = _conv_body(x_ref, w_ref, b_ref, xpad_ref, hoist_pad=hoist_pad)
    o_ref[...] = y.astype(o_ref.dtype)


# --------------------------------- Wrapper -------------------------------------

def conv3x3(x, w9, b, *, mode="relu", pool=False):
    """Fused 3x3 conv (pad=1) [+ReLU] [+2x2 maxpool] as one pallas_call.

    x:  (N, H, W, Cin)   float; cast to bf16 internally
    w9: (9, Cin, Cout)   tap-major weights (tap = kh*3 + kw)
    b:  (Cout,)
    mode: "relu"     -> bf16 relu(conv)        [optionally pooled]
          "dual"     -> (f32 conv, bf16 relu(conv))
          "pre_only" -> f32 conv
    """
    N, H, W, Cin = x.shape
    Cout = w9.shape[-1]
    TC = min(Cout, _COUT_TILE)
    assert Cout % TC == 0
    n_ct = Cout // TC
    if pool:
        # torch MaxPool2d floor-division semantics differ for odd dims.
        assert H % 2 == 0 and W % 2 == 0, "fused 2x2 maxpool needs even H, W"
    Ho, Wo = (H // 2, W // 2) if pool else (H, W)

    # Fold the whole batch into the matmul M dimension when the plane is tiny
    # (post-pool tail layers): M = N*H*W keeps the MXU pipeline fed.
    NB = N if H * W <= _FOLD_BATCH_HW else 1
    n_nb = N // NB
    # Hoist the padded-plane build when it is reused across cout tiles.
    hoist_pad = (n_ct > 1) and (NB == 1)

    x = x.astype(jnp.bfloat16)
    w9 = w9.astype(jnp.bfloat16)
    b2 = b.reshape(1, Cout).astype(jnp.float32)

    # VMEM working-set check (whole-plane blocks).
    bpe = 2
    in_bytes = NB * H * W * Cin * bpe
    pad_bytes = NB * (H + 2) * (W + 2) * Cin * bpe
    w_bytes = 9 * Cin * TC * bpe
    acc_bytes = NB * H * W * TC * 4
    out_elem_bytes = {"relu": 2, "pre_only": 4, "dual": 6}[mode]
    out_bytes = NB * Ho * Wo * TC * out_elem_bytes
    est = 2 * in_bytes + pad_bytes + 2 * w_bytes + 2 * out_bytes + 2 * acc_bytes
    # TODO(synk): replace this guard with H-tiling (2-row halo via manual DMA)
    # for real style-transfer resolutions, especially on v7x (64 MiB VMEM).
    assert est <= _VMEM_LIMIT, (
        f"whole-plane conv working set (~{est >> 20} MiB) exceeds VMEM budget "
        f"({_VMEM_LIMIT >> 20} MiB); H-tiling with a 2-row halo is required")

    in_specs = [
        pl.BlockSpec((NB, H, W, Cin), lambda n, c: (n, 0, 0, 0)),
        pl.BlockSpec((9, Cin, TC), lambda n, c: (0, 0, c)),
        pl.BlockSpec((1, TC), lambda n, c: (0, c)),
    ]
    scratch_shapes = [pltpu.VMEM((NB, H + 2, W + 2, Cin), jnp.bfloat16)]

    # The cout axis carries the padded-plane scratch across steps when hoisted
    # -> must be "arbitrary"; otherwise both axes are safe to mark parallel
    # (megacore-friendly for the folded tail layers on v7x).
    dims = ("parallel", "arbitrary") if hoist_pad else ("parallel", "parallel")
    cparams = pltpu.CompilerParams(dimension_semantics=dims,
                                   vmem_limit_bytes=_VMEM_LIMIT)
    cost = pl.CostEstimate(
        flops=2 * N * H * W * 9 * Cin * Cout,
        transcendentals=0,
        bytes_accessed=(N * H * W * Cin * bpe          # activations in
                        + n_nb * 9 * Cin * Cout * bpe  # weights (per batch blk)
                        + Cout * 4                      # bias
                        + N * Ho * Wo * Cout * out_elem_bytes))

    if mode == "dual":
        assert not pool
        out_shape = (jax.ShapeDtypeStruct((N, H, W, Cout), jnp.float32),
                     jax.ShapeDtypeStruct((N, H, W, Cout), jnp.bfloat16))
        out_specs = (pl.BlockSpec((NB, H, W, TC), lambda n, c: (n, 0, 0, c)),
                     pl.BlockSpec((NB, H, W, TC), lambda n, c: (n, 0, 0, c)))
        kernel = functools.partial(_conv_dual_kernel, hoist_pad=hoist_pad)
    elif mode == "pre_only":
        assert not pool
        out_shape = jax.ShapeDtypeStruct((N, H, W, Cout), jnp.float32)
        out_specs = pl.BlockSpec((NB, H, W, TC), lambda n, c: (n, 0, 0, c))
        kernel = functools.partial(_conv_pre_kernel, hoist_pad=hoist_pad)
    else:
        out_shape = jax.ShapeDtypeStruct((N, Ho, Wo, Cout), jnp.bfloat16)
        out_specs = pl.BlockSpec((NB, Ho, Wo, TC), lambda n, c: (n, 0, 0, c))
        kernel = functools.partial(_conv_relu_kernel, pool=pool,
                                   hoist_pad=hoist_pad)

    return pl.pallas_call(
        kernel,
        out_shape=out_shape,
        grid=(n_nb, n_ct),
        in_specs=in_specs,
        out_specs=out_specs,
        scratch_shapes=scratch_shapes,
        compiler_params=cparams,
        cost_estimate=cost,
    )(x, w9, b2)


# -------------------------------- VGG19[:29] ------------------------------------

# Conv out-channels / 'M' = MaxPool2d(2,2); mirrors torchvision vgg19.features[:29]
_VGG19_CFG = [64, 64, 'M', 128, 128, 'M', 256, 256, 256, 256, 'M',
              512, 512, 512, 512, 'M', 512]
_CHOSEN = {0, 5, 10, 19, 28}       # chosen_features = ['0','5','10','19','28']


def _build_plan():
    """Per-conv plan: (torch_layer_idx, cout, pool_after, chosen)."""
    plan = []
    layer = 0
    i = 0
    while i < len(_VGG19_CFG):
        cout = _VGG19_CFG[i]
        pool_after = (i + 1 < len(_VGG19_CFG) and _VGG19_CFG[i + 1] == 'M')
        plan.append((layer, cout, pool_after, layer in _CHOSEN))
        layer += 2 + (1 if pool_after else 0)     # conv + relu (+ pool)
        i += 2 if pool_after else 1
    return plan


_PLAN = _build_plan()


def make_vgg_params(key):
    """He-style init; weights stored tap-major (9, Cin, Cout) in bf16.

    NOTE: pretrained torchvision weights (Cout, Cin, 3, 3) must be permuted
    via transpose(2, 3, 1, 0) -> (3, 3, Cin, Cout) BEFORE the reshape below,
    otherwise the tap order is scrambled.
    """
    params = []
    cin = 3
    for _, cout, _, _ in _PLAN:
        key, kw_, kb = jax.random.split(key, 3)
        fan_in = 9 * cin
        w = jax.random.normal(kw_, (3, 3, cin, cout), jnp.float32) \
            * jnp.sqrt(2.0 / fan_in)
        b = jax.random.normal(kb, (cout,), jnp.float32) * 0.01
        params.append((w.reshape(9, cin, cout).astype(jnp.bfloat16),
                       b.astype(jnp.float32)))
        cin = cout
    return params


def vgg_features(x_nchw, params):
    """Equivalent of VGG.forward: list of chosen feature maps (NCHW, f32)."""
    x = jnp.transpose(x_nchw, (0, 2, 3, 1)).astype(jnp.bfloat16)   # NCHW->NHWC
    features = []
    last = len(_PLAN) - 1
    for ci, (_, _, pool_after, chosen) in enumerate(_PLAN):
        w9, b = params[ci]
        if chosen and ci != last:
            assert not pool_after        # no chosen conv is followed by a pool
            # chosen feature = conv output BEFORE the subsequent ReLU layer
            pre, post = conv3x3(x, w9, b, mode="dual")
            features.append(jnp.transpose(pre, (0, 3, 1, 2)))       # -> NCHW
            x = post
        elif chosen:                     # layer 28: last layer, no ReLU applied
            pre = conv3x3(x, w9, b, mode="pre_only")
            features.append(jnp.transpose(pre, (0, 3, 1, 2)))       # -> NCHW
        else:
            x = conv3x3(x, w9, b, mode="relu", pool=pool_after)
    return features


# ------------------------------- Self checks ------------------------------------

def _conv_ref(x, w9, b):
    """f32 NHWC reference conv3x3 (pad=1) + bias."""
    cin, cout = w9.shape[1], w9.shape[2]
    w = w9.astype(jnp.float32).reshape(3, 3, cin, cout)
    y = jax.lax.conv_general_dilated(
        x.astype(jnp.float32), w, window_strides=(1, 1), padding="SAME",
        dimension_numbers=("NHWC", "HWIO", "NHWC"))
    return y + b.astype(jnp.float32)


def _rel_err(a, b):
    a = a.astype(jnp.float32)
    b = b.astype(jnp.float32)
    return float(jnp.max(jnp.abs(a - b)) / (jnp.max(jnp.abs(b)) + 1e-6))


if __name__ == "__main__":
    key = jax.random.PRNGKey(0)
    kx, kp, k1, k2, k3, k4, k5, k6 = jax.random.split(key, 8)

    # --- unit check A: cout-tiled path (n_ct>1, hoisted padding scratch) ------
    cout_t = 2 * _COUT_TILE
    xa = jax.random.normal(k1, (1, 8, 8, 16), jnp.float32)
    wa = jax.random.normal(k2, (9, 16, cout_t), jnp.float32) * 0.1
    ba = jax.random.normal(k3, (cout_t,), jnp.float32) * 0.1
    got_a = jax.block_until_ready(conv3x3(xa, wa, ba, mode="pre_only"))
    assert _rel_err(got_a, _conv_ref(xa, wa, ba)) < 5e-2

    # --- unit check B: batch-folded path + fused ReLU + 2x2 maxpool -----------
    xb = jax.random.normal(k4, (2, 4, 4, 32), jnp.float32)
    wb = jax.random.normal(k5, (9, 32, 64), jnp.float32) * 0.1
    bb = jax.random.normal(k6, (64,), jnp.float32) * 0.1
    got_b = jax.block_until_ready(conv3x3(xb, wb, bb, mode="relu", pool=True))
    ref_b = jnp.maximum(_conv_ref(xb, wb, bb), 0.0)
    ref_b = jax.lax.reduce_window(ref_b, -jnp.inf, jax.lax.max,
                                  (1, 2, 2, 1), (1, 2, 2, 1), "VALID")
    assert _rel_err(got_b, ref_b) < 5e-2

    # --- full VGG19[:29] feature extractor (module-equivalent forward) --------
    # Small VGG-consistent input: batch=2, RGB, 16x16 spatial.
    x = jax.random.normal(kx, (2, 3, 16, 16), jnp.float32)
    params = make_vgg_params(kp)

    feats = jax.jit(vgg_features)(x, params)
    feats = jax.block_until_ready(feats)

    expected = [(2, 64, 16, 16), (2, 128, 8, 8), (2, 256, 4, 4),
                (2, 512, 2, 2), (2, 512, 1, 1)]
    got = [tuple(f.shape) for f in feats]
    assert got == expected, f"shape mismatch: {got} vs {expected}"
    assert all(f.dtype == jnp.float32 for f in feats)
    assert all(bool(jnp.all(jnp.isfinite(f))) for f in feats)
    print("KERNEL_OK")
</pallas_src>

<mosaic_0001>
module attributes {stable_mosaic.version = 11 : i64} {
  func.func @_conv_pre_kernel(%arg0: i32, %arg1: i32, %arg2: memref<1x8x8x16xbf16, #tpu.memory_space<vmem>>, %arg3: memref<9x16x256xbf16, #tpu.memory_space<vmem>>, %arg4: memref<1x256xf32, #tpu.memory_space<vmem>>, %arg5: memref<1x8x8x256xf32, #tpu.memory_space<vmem>>, %arg6: memref<1x10x10x16xbf16, #tpu.memory_space<vmem>>) attributes {dimension_semantics = [#tpu.dimension_semantics<parallel>, #tpu.dimension_semantics<arbitrary>], iteration_bounds = array<i64: 1, 2>, scalar_prefetch = 0 : i64, scratch_operands = 1 : i64, tpu.core_type = #tpu.core_type<tc>, window_params = [{transform_indices = @transform_0, window_bounds = array<i64: 1, 8, 8, 16>}, {transform_indices = @transform_1, window_bounds = array<i64: 9, 16, 256>}, {transform_indices = @transform_2, window_bounds = array<i64: 1, 256>}, {transform_indices = @transform_3, window_bounds = array<i64: 1, 8, 8, 256>}]} {
    %c0_i32 = arith.constant 0 : i32
    %0 = arith.cmpi eq, %arg1, %c0_i32 : i32
    %1 = arith.extui %0 : i1 to i32
    %c0_i32_0 = arith.constant 0 : i32
    %2 = arith.cmpi ne, %1, %c0_i32_0 : i32
    scf.if %2 {
      %cst_70 = arith.constant 0.000000e+00 : bf16
      %63 = vector.broadcast %cst_70 : bf16 to vector<1x10x10x16xbf16>
      %c0_71 = arith.constant 0 : index
      %c0_72 = arith.constant 0 : index
      %c0_73 = arith.constant 0 : index
      %c0_74 = arith.constant 0 : index
      %64 = vector.load %arg6[%c0_71, %c0_72, %c0_73, %c0_74] : memref<1x10x10x16xbf16, #tpu.memory_space<vmem>>, vector<1x10x10x16xbf16>
      tpu.vector_store %arg6[%c0_71, %c0_72, %c0_73, %c0_74], %63 {strides = array<i32>} : memref<1x10x10x16xbf16, #tpu.memory_space<vmem>>, vector<1x10x10x16xbf16>,
      %c0_75 = arith.constant 0 : index
      %c0_76 = arith.constant 0 : index
      %c0_77 = arith.constant 0 : index
      %c0_78 = arith.constant 0 : index
      %65 = vector.load %arg2[%c0_75, %c0_76, %c0_77, %c0_78] : memref<1x8x8x16xbf16, #tpu.memory_space<vmem>>, vector<1x8x8x16xbf16>
      %c0_79 = arith.constant 0 : index
      %c1_80 = arith.constant 1 : index
      %c1_81 = arith.constant 1 : index
      %c0_82 = arith.constant 0 : index
      %66 = vector.load %arg6[%c0_79, %c1_80, %c1_81, %c0_82] : memref<1x10x10x16xbf16, #tpu.memory_space<vmem>>, vector<1x8x8x16xbf16>
      tpu.vector_store %arg6[%c0_79, %c1_80, %c1_81, %c0_82], %65 {strides = array<i32>} : memref<1x10x10x16xbf16, #tpu.memory_space<vmem>>, vector<1x8x8x16xbf16>,
    } else {
    }
    %cst = arith.constant 0.000000e+00 : f32
    %3 = vector.broadcast %cst : f32 to vector<64x256xf32>
    %c0 = arith.constant 0 : index
    %c0_1 = arith.constant 0 : index
    %c0_2 = arith.constant 0 : index
    %c0_3 = arith.constant 0 : index
    %4 = vector.load %arg6[%c0, %c0_1, %c0_2, %c0_3] : memref<1x10x10x16xbf16, #tpu.memory_space<vmem>>, vector<1x8x8x16xbf16>
    %5 = vector.shape_cast %4 : vector<1x8x8x16xbf16> to vector<64x16xbf16>
    %c0_4 = arith.constant 0 : index
    %c0_5 = arith.constant 0 : index
    %c0_6 = arith.constant 0 : index
    %6 = vector.load %arg3[%c0_4, %c0_5, %c0_6] : memref<9x16x256xbf16, #tpu.memory_space<vmem>>, vector<1x16x256xbf16>
    %7 = vector.shape_cast %6 : vector<1x16x256xbf16> to vector<16x256xbf16>
    %cst_7 = arith.constant dense<0.000000e+00> : vector<64x256xf32>
    %8 = tpu.matmul %5, %7, %cst_7 {dimension_numbers = #tpu.dot_dimension_numbers<[1], [0], [0], [1], [0, 0, 1, 1], [], []>} : vector<64x16xbf16>, vector<16x256xbf16>, vector<64x256xf32> -> vector<64x256xf32>
    %9 = arith.addf %3, %8 : vector<64x256xf32>
    %c0_8 = arith.constant 0 : index
    %c0_9 = arith.constant 0 : index
    %c1 = arith.constant 1 : index
    %c0_10 = arith.constant 0 : index
    %10 = vector.load %arg6[%c0_8, %c0_9, %c1, %c0_10] : memref<1x10x10x16xbf16, #tpu.memory_space<vmem>>, vector<1x8x8x16xbf16>
    %11 = vector.shape_cast %10 : vector<1x8x8x16xbf16> to vector<64x16xbf16>
    %c1_11 = arith.constant 1 : index
    %c0_12 = arith.constant 0 : index
    %c0_13 = arith.constant 0 : index
    %12 = vector.load %arg3[%c1_11, %c0_12, %c0_13] : memref<9x16x256xbf16, #tpu.memory_space<vmem>>, vector<1x16x256xbf16>
    %13 = vector.shape_cast %12 : vector<1x16x256xbf16> to vector<16x256xbf16>
    %cst_14 = arith.constant dense<0.000000e+00> : vector<64x256xf32>
    %14 = tpu.matmul %11, %13, %cst_14 {dimension_numbers = #tpu.dot_dimension_numbers<[1], [0], [0], [1], [0, 0, 1, 1], [], []>} : vector<64x16xbf16>, vector<16x256xbf16>, vector<64x256xf32> -> vector<64x256xf32>
    %15 = arith.addf %9, %14 : vector<64x256xf32>
    %c0_15 = arith.constant 0 : index
    %c0_16 = arith.constant 0 : index
    %c2 = arith.constant 2 : index
    %c0_17 = arith.constant 0 : index
    %16 = vector.load %arg6[%c0_15, %c0_16, %c2, %c0_17] : memref<1x10x10x16xbf16, #tpu.memory_space<vmem>>, vector<1x8x8x16xbf16>
    %17 = vector.shape_cast %16 : vector<1x8x8x16xbf16> to vector<64x16xbf16>
    %c2_18 = arith.constant 2 : index
    %c0_19 = arith.constant 0 : index
    %c0_20 = arith.constant 0 : index
    %18 = vector.load %arg3[%c2_18, %c0_19, %c0_20] : memref<9x16x256xbf16, #tpu.memory_space<vmem>>, vector<1x16x256xbf16>
    %19 = vector.shape_cast %18 : vector<1x16x256xbf16> to vector<16x256xbf16>
    %cst_21 = arith.constant dense<0.000000e+00> : vector<64x256xf32>
    %20 = tpu.matmul %17, %19, %cst_21 {dimension_numbers = #tpu.dot_dimension_numbers<[1], [0], [0], [1], [0, 0, 1, 1], [], []>} : vector<64x16xbf16>, vector<16x256xbf16>, vector<64x256xf32> -> vector<64x256xf32>
    %21 = arith.addf %15, %20 : vector<64x256xf32>
    %c0_22 = arith.constant 0 : index
    %c1_23 = arith.constant 1 : index
    %c0_24 = arith.constant 0 : index
    %c0_25 = arith.constant 0 : index
    %22 = vector.load %arg6[%c0_22, %c1_23, %c0_24, %c0_25] : memref<1x10x10x16xbf16, #tpu.memory_space<vmem>>, vector<1x8x8x16xbf16>
    %23 = vector.shape_cast %22 : vector<1x8x8x16xbf16> to vector<64x16xbf16>
    %c3 = arith.constant 3 : index
    %c0_26 = arith.constant 0 : index
    %c0_27 = arith.constant 0 : index
    %24 = vector.load %arg3[%c3, %c0_26, %c0_27] : memref<9x16x256xbf16, #tpu.memory_space<vmem>>, vector<1x16x256xbf16>
    %25 = vector.shape_cast %24 : vector<1x16x256xbf16> to vector<16x256xbf16>
    %cst_28 = arith.constant dense<0.000000e+00> : vector<64x256xf32>
    %26 = tpu.matmul %23, %25, %cst_28 {dimension_numbers = #tpu.dot_dimension_numbers<[1], [0], [0], [1], [0, 0, 1, 1], [], []>} : vector<64x16xbf16>, vector<16x256xbf16>, vector<64x256xf32> -> vector<64x256xf32>
    %27 = arith.addf %21, %26 : vector<64x256xf32>
    %c0_29 = arith.constant 0 : index
    %c1_30 = arith.constant 1 : index
    %c1_31 = arith.constant 1 : index
    %c0_32 = arith.constant 0 : index
    %28 = vector.load %arg6[%c0_29, %c1_30, %c1_31, %c0_32] : memref<1x10x10x16xbf16, #tpu.memory_space<vmem>>, vector<1x8x8x16xbf16>
    %29 = vector.shape_cast %28 : vector<1x8x8x16xbf16> to vector<64x16xbf16>
    %c4 = arith.constant 4 : index
    %c0_33 = arith.constant 0 : index
    %c0_34 = arith.constant 0 : index
    %30 = vector.load %arg3[%c4, %c0_33, %c0_34] : memref<9x16x256xbf16, #tpu.memory_space<vmem>>, vector<1x16x256xbf16>
    %31 = vector.shape_cast %30 : vector<1x16x256xbf16> to vector<16x256xbf16>
    %cst_35 = arith.constant dense<0.000000e+00> : vector<64x256xf32>
    %32 = tpu.matmul %29, %31, %cst_35 {dimension_numbers = #tpu.dot_dimension_numbers<[1], [0], [0], [1], [0, 0, 1, 1], [], []>} : vector<64x16xbf16>, vector<16x256xbf16>, vector<64x256xf32> -> vector<64x256xf32>
    %33 = arith.addf %27, %32 : vector<64x256xf32>
    %c0_36 = arith.constant 0 : index
    %c1_37 = arith.constant 1 : index
    %c2_38 = arith.constant 2 : index
    %c0_39 = arith.constant 0 : index
    %34 = vector.load %arg6[%c0_36, %c1_37, %c2_38, %c0_39] : memref<1x10x10x16xbf16, #tpu.memory_space<vmem>>, vector<1x8x8x16xbf16>
    %35 = vector.shape_cast %34 : vector<1x8x8x16xbf16> to vector<64x16xbf16>
    %c5 = arith.constant 5 : index
    %c0_40 = arith.constant 0 : index
    %c0_41 = arith.constant 0 : index
    %36 = vector.load %arg3[%c5, %c0_40, %c0_41] : memref<9x16x256xbf16, #tpu.memory_space<vmem>>, vector<1x16x256xbf16>
    %37 = vector.shape_cast %36 : vector<1x16x256xbf16> to vector<16x256xbf16>
    %cst_42 = arith.constant dense<0.000000e+00> : vector<64x256xf32>
    %38 = tpu.matmul %35, %37, %cst_42 {dimension_numbers = #tpu.dot_dimension_numbers<[1], [0], [0], [1], [0, 0, 1, 1], [], []>} : vector<64x16xbf16>, vector<16x256xbf16>, vector<64x256xf32> -> vector<64x256xf32>
    %39 = arith.addf %33, %38 : vector<64x256xf32>
    %c0_43 = arith.constant 0 : index
    %c2_44 = arith.constant 2 : index
    %c0_45 = arith.constant 0 : index
    %c0_46 = arith.constant 0 : index
    %40 = vector.load %arg6[%c0_43, %c2_44, %c0_45, %c0_46] : memref<1x10x10x16xbf16, #tpu.memory_space<vmem>>, vector<1x8x8x16xbf16>
    %41 = vector.shape_cast %40 : vector<1x8x8x16xbf16> to vector<64x16xbf16>
    %c6 = arith.constant 6 : index
    %c0_47 = arith.constant 0 : index
    %c0_48 = arith.constant 0 : index
    %42 = vector.load %arg3[%c6, %c0_47, %c0_48] : memref<9x16x256xbf16, #tpu.memory_space<vmem>>, vector<1x16x256xbf16>
    %43 = vector.shape_cast %42 : vector<1x16x256xbf16> to vector<16x256xbf16>
    %cst_49 = arith.constant dense<0.000000e+00> : vector<64x256xf32>
    %44 = tpu.matmul %41, %43, %cst_49 {dimension_numbers = #tpu.dot_dimension_numbers<[1], [0], [0], [1], [0, 0, 1, 1], [], []>} : vector<64x16xbf16>, vector<16x256xbf16>, vector<64x256xf32> -> vector<64x256xf32>
    %45 = arith.addf %39, %44 : vector<64x256xf32>
    %c0_50 = arith.constant 0 : index
    %c2_51 = arith.constant 2 : index
    %c1_52 = arith.constant 1 : index
    %c0_53 = arith.constant 0 : index
    %46 = vector.load %arg6[%c0_50, %c2_51, %c1_52, %c0_53] : memref<1x10x10x16xbf16, #tpu.memory_space<vmem>>, vector<1x8x8x16xbf16>
    %47 = vector.shape_cast %46 : vector<1x8x8x16xbf16> to vector<64x16xbf16>
    %c7 = arith.constant 7 : index
    %c0_54 = arith.constant 0 : index
    %c0_55 = arith.constant 0 : index
    %48 = vector.load %arg3[%c7, %c0_54, %c0_55] : memref<9x16x256xbf16, #tpu.memory_space<vmem>>, vector<1x16x256xbf16>
    %49 = vector.shape_cast %48 : vector<1x16x256xbf16> to vector<16x256xbf16>
    %cst_56 = arith.constant dense<0.000000e+00> : vector<64x256xf32>
    %50 = tpu.matmul %47, %49, %cst_56 {dimension_numbers = #tpu.dot_dimension_numbers<[1], [0], [0], [1], [0, 0, 1, 1], [], []>} : vector<64x16xbf16>, vector<16x256xbf16>, vector<64x256xf32> -> vector<64x256xf32>
    %51 = arith.addf %45, %50 : vector<64x256xf32>
    %c0_57 = arith.constant 0 : index
    %c2_58 = arith.constant 2 : index
    %c2_59 = arith.constant 2 : index
    %c0_60 = arith.constant 0 : index
    %52 = vector.load %arg6[%c0_57, %c2_58, %c2_59, %c0_60] : memref<1x10x10x16xbf16, #tpu.memory_space<vmem>>, vector<1x8x8x16xbf16>
    %53 = vector.shape_cast %52 : vector<1x8x8x16xbf16> to vector<64x16xbf16>
    %c8 = arith.constant 8 : index
    %c0_61 = arith.constant 0 : index
    %c0_62 = arith.constant 0 : index
    %54 = vector.load %arg3[%c8, %c0_61, %c0_62] : memref<9x16x256xbf16, #tpu.memory_space<vmem>>, vector<1x16x256xbf16>
    %55 = vector.shape_cast %54 : vector<1x16x256xbf16> to vector<16x256xbf16>
    %cst_63 = arith.constant dense<0.000000e+00> : vector<64x256xf32>
    %56 = tpu.matmul %53, %55, %cst_63 {dimension_numbers = #tpu.dot_dimension_numbers<[1], [0], [0], [1], [0, 0, 1, 1], [], []>} : vector<64x16xbf16>, vector<16x256xbf16>, vector<64x256xf32> -> vector<64x256xf32>
    %57 = arith.addf %51, %56 : vector<64x256xf32>
    %c0_64 = arith.constant 0 : index
    %c0_65 = arith.constant 0 : index
    %58 = vector.load %arg4[%c0_64, %c0_65] : memref<1x256xf32, #tpu.memory_space<vmem>>, vector<1x256xf32>
    %59 = vector.broadcast %58 : vector<1x256xf32> to vector<64x256xf32>
    %60 = arith.addf %57, %59 : vector<64x256xf32>
    %61 = vector.shape_cast %60 : vector<64x256xf32> to vector<1x8x8x256xf32>
    %c0_66 = arith.constant 0 : index
    %c0_67 = arith.constant 0 : index
    %c0_68 = arith.constant 0 : index
    %c0_69 = arith.constant 0 : index
    %62 = vector.load %arg5[%c0_66, %c0_67, %c0_68, %c0_69] : memref<1x8x8x256xf32, #tpu.memory_space<vmem>>, vector<1x8x8x256xf32>
    tpu.vector_store %arg5[%c0_66, %c0_67, %c0_68, %c0_69], %61 {strides = array<i32>} : memref<1x8x8x256xf32, #tpu.memory_space<vmem>>, vector<1x8x8x256xf32>,
    return
  }
  func.func @transform_0(%arg0: i32, %arg1: i32) -> (i32, i32, i32, i32) {
    %c0_i32 = arith.constant 0 : i32
    %c0_i32_0 = arith.constant 0 : i32
    %c0_i32_1 = arith.constant 0 : i32
    %c0_i32_2 = arith.constant 0 : i32
    return %arg0, %c0_i32, %c0_i32_0, %c0_i32_1 : i32, i32, i32, i32
  }
  func.func @transform_1(%arg0: i32, %arg1: i32) -> (i32, i32, i32) {
    %c0_i32 = arith.constant 0 : i32
    %c0_i32_0 = arith.constant 0 : i32
    %c0_i32_1 = arith.constant 0 : i32
    return %c0_i32, %c0_i32_0, %arg1 : i32, i32, i32
  }
  func.func @transform_2(%arg0: i32, %arg1: i32) -> (i32, i32) {
    %c0_i32 = arith.constant 0 : i32
    %c0_i32_0 = arith.constant 0 : i32
    return %c0_i32, %arg1 : i32, i32
  }
  func.func @transform_3(%arg0: i32, %arg1: i32) -> (i32, i32, i32, i32) {
    %c0_i32 = arith.constant 0 : i32
    %c0_i32_0 = arith.constant 0 : i32
    %c0_i32_1 = arith.constant 0 : i32
    return %arg0, %c0_i32, %c0_i32_0, %arg1 : i32, i32, i32, i32
  }
}

</mosaic_0001>

<bundles_post_ra>
// kernel: tpu_custom_call.1
= control target key start
LH: loop header
LB: loop body
LE: loop exit
PB: predicated region body
PF: predicated region fallthrough
CT: control target
= control target key end

     0   :  { %s3553_s0 = inlined_call_operand.hbm [shape: bf16[1,8,8,16], index: 0, kind: input, shape index: {}]   ;;  %s3554_s1 = inlined_call_operand.hbm [shape: bf16[9,16,512], index: 1, kind: input, shape index: {}]   ;;  %s3555_s2 = inlined_call_operand.hbm [shape: f32[1,512], index: 2, kind: input, shape index: {}]   ;;  %s3556_s3 = inlined_call_operand.hbm [shape: f32[1,8,8,512], index: 3, kind: output, shape index: {}]  }
   0x1   :  { %3557 = sst [smem:[#allocation13_spill]] %s3553_s0 }
   0x2   :  { %3558 = sst [smem:[#allocation14_spill]] %s3554_s1 }
   0x3   :  { %8 = vsyncpa [#allocation4], 0 }
   0x4   :  { %9 = vsyncpa [#allocation7], 0 }
   0x5   :  { %11 = vsyncpa [#allocation7 + $0x1], 0 }
   0x6   :  { %12 = vsyncpa [#allocation5], 0 }
   0x7   :  { %14 = vsyncpa [#allocation5 + $0x1], 0  ;;  %s2762_s12 = smov 0   ;;  %s2764_s13 = smov 0  }
   0x8   :  { %s2766_s14 = smov 0   ;;  %s2768_s15 = smov 0  }
   0x9   :  { %s2770_s16 = smov 0   ;;  %s2772_s17 = smov 0  }
   0xa LB: > { %s29_s18 = sadd.s32 1, %s2726_s16  ;;  %s65_s19 = sadd.s32 1, %s2718_s14  ;;  %s2730_s17 = sphi %s2772_s17, %s20_s17   ;;  %s2726_s16 = sphi %s2770_s16, %s3578_s16   ;;  %s2722_s15 = sphi %s2768_s15, %s3577_s15   ;;  %s2718_s14 = sphi %s2766_s14, %s3576_s14   ;;  %s2714_s13 = sphi %s2764_s13, %s3575_s13   ;;  %s2710_s12 = sphi %s2762_s12, %s3574_s12  }
   0xb   : > { %p30_p0 = scmp.ge.s32.totalorder %s29_s18, 2  ;;  %p72_p1 = scmp.ne.s32.totalorder %s2718_s14, %s2714_s13 }
   0xc   : > { %p73_p2 = scmp.eq.s32.totalorder %s2730_s17, 0  ;;  %p2184_p3 = scmp.ge.s32.totalorder %s2730_s17, 2 }
   0xd   : > { %s3580_s18 = smov (%p30_p0, %s29_s18), 0  ;;  %p2493_p5 = scmp.lt.s32.totalorder %s2730_s17, 2 }
   0xe   : > { %p74_p4 = por %p73_p2, %p72_p1  ;;  %s62_s20 = ssub.s32 %s2726_s16, %s3580_s18 }
   0xf   : > { %s173_s21 = sand.u32 1, %s2730_s17   ;;  %p63_p6 = scmp.eq.s32.totalorder %s62_s20, 0 }
  0x10   : > { %s175_s22 = sand.u32 1, %s2718_s14   ;;  %s2431_s23 = sshll.u32 %s2726_s16, 3 }
  0x11   : > { %s2810_s24 = scalar_select %p63_p6, %s2718_s14, %s65_s19  }
  0x12   : > { %s2465_s25 = smul.u32 144, %s175_s22  ;;  %s3559_s1 = sld [smem:[#allocation14_spill]] }
  0x13   : > { %p2817_p7 = pnand %p2493_p5, %p74_p4  ;;  %s2821_s6 = scalar_lea.sflag [#allocation7], %s173_s21 }
  0x14   : > { %s177_s4 = scalar_lea.vmem [#allocation6], %s2465_s25  ;;  %s2732_s7 = smov 256  }
  0x15   : > { %s185_s5 = sshll.u32 %s177_s4, 4  ;;  %s2733_s8 = smov 128   ;;  %s186_s5 = int_to_ptr.vmem [resolvable:$true] %s185_s5 }
  0x16   : > { %s2734_s9 = smov 8   ;;  %s2827_s10 = sadd.s32 4294967295, %s2730_s17  }
  0x17   : > { %s2181_s11 = sadd.s32 4294967294, %s2730_s17   ;;  %p78_p8 = scmp.ne.s32.totalorder %s2714_s13, %s2710_s12 }
  0x18   : > { %s182_s28 = scalar_lea.hbm %s3559_s1, %s2431_s23  ;;  %p79_p9 = scmp.eq.s32.totalorder %s2827_s10, 0 }
  0x19   : > { %s183_s29 = sshll.u32 %s182_s28, 4  ;;  %p130_p10 = scmp.eq.s32.totalorder %s2827_s10, 1  ;;  %s184_s29 = int_to_ptr.hbm [resolvable:$true] %s183_s29 }
  0x1a   : > { %2484 = dma.hbm_to_vmem [thread:$0]  (!%p2817_p7), %s184_s29, 2304, %s186_s5, %s2821_s6, %s2732_s7, %s2733_s8, %s2734_s9  }
  0x1b   : > { %p136_p11 = scmp.eq.s32.totalorder %s2181_s11, 1  ;;  %p2836_p12 = por %p79_p9, %p78_p8 }
  0x1c   : > { %p2182_p13 = scmp.ge.s32.totalorder %s2730_s17, 1  ;;  %p2844_p0 = por %p130_p10, %p72_p1 }
  0x1d   : > { %p2848_p2 = por %p136_p11, %p78_p8  ;;  %p143_p4 = scmp.lt.s32.totalorder %s2730_s17, 3 }
  0x1e   : > { %s3564_s0 = sld [smem:[#allocation13_spill]]  ;;  %s2735_s28 = smov [#allocation3]  }
  0x1f   : > { %p2856_p5 = pnand %p2182_p13, %p143_p4  ;;  %s159_s29 = sshll.u32 %s2735_s28, 4  ;;  %s160_s29 = int_to_ptr.vmem [resolvable:$true] %s159_s29 }
  0x20   : > { %s2187_s4 = sshll.u32 %s175_s22, 1  ;;  %s2188_s5 = sshll.u32 %s2726_s16, 1 }
  0x21   : > { %p2477_p1 = pneg %p2856_p5  ;;  %s199_s7 = scalar_lea.vmem [#allocation8], %s2187_s4 }
  0x22   : > { %s207_s8 = sshll.u32 %s199_s7, 4  ;;  %s203_s23 = scalar_lea.hbm %s3555_s2, %s2188_s5  ;;  %s208_s8 = int_to_ptr.vmem [resolvable:$true] %s207_s8 }
  0x23   : > { %p2478_p6 = pnand %p2477_p1, %p79_p9  ;;  %s2736_s25 = smov 64  }
  0x24   : > { %s157_s26 = sshll.u32 %s3564_s0, 4  ;;  %s2737_s0 = smov 4   ;;  %s158_s26 = int_to_ptr.hbm [resolvable:$true] %s157_s26 }
  0x25   : > { %2480 = dma.hbm_to_vmem [thread:$0]  (!%p2478_p6), %s158_s26, 512, %s160_s29, [#allocation4], %s2736_s25, %s2736_s25, %s2737_s0  }
  0x26   : > { %s205_s1 = sshll.u32 %s203_s23, 4  ;;  %216 = sbr.rel (%p2856_p5) target bundleno = 540 (0x21c), region = 32  ;;  %s206_s1 = int_to_ptr.hbm [resolvable:$true] %s205_s1 }
  0x27   : > { %2487 = dma.hbm_to_vmem [thread:$0]  (!%p2817_p7), %s206_s1, 32, %s208_s8, %s2821_s6  }
  0x2b   : > { %2697 = dma.done.wait (%p79_p9), [#allocation4], 512  }
  0x2c   : > { %2699 = vsyncadd (%p79_p9), [#allocation4], 4294966784  ;;  %s223_s22 = sand.u32 1, %s2827_s10   ;;  %s2881_s28 = sand.u32 1, %s2714_s13  }
  0x2d   : > { %s2466_s0 = smul.u32 144, %s2881_s28  ;;  %s224_s26 = scalar_lea.sflag [#allocation7], %s223_s22 }
  0x2f   : > { %s2884_s30 = scalar_lea.vmem [#allocation6], %s2466_s0 }
  0x30   : > { %2701 = dma.done.wait (%p2836_p12), %s224_s26, 2336  }
  0x31   : > { %2703 = vsyncadd (%p2836_p12), %s224_s26, 4294964960  ;;  %s2191_s1 = sshll.u32 %s2881_s28, 1  ;;  %s2192_s6 = sshll.u32 %s2881_s28, 7 }
  0x32   : > { %s2892_s27 = scalar_lea.vmem [#allocation8], %s2191_s1  ;;  %s2894_s29 = scalar_lea.vmem [#allocation9], %s2192_s6 }
  0x33   : > { %p2193_p7 = scmp.ne.s32.totalorder %s2722_s15, 0 }
  0x35   : > { %273 = sbr.rel (%p2193_p7) target bundleno = 95 (0x5f), region = 48 }
  0x3a   : > { %vm274_vm0 = vcmask 125952   ;;  %v2738_v0 = vmov 0   ;;  %v296_v1 = vld [vmem:[#allocation3] sm:$0xf]  ;;  %v297_v2 = vld [vmem:[#allocation3 + $0x4] sm:$0xf] }
  0x3b   : > { %278 = vst.msk [vmem:[#allocation2 + $0x8] sm:$0xf] %vm274_vm0, %v2738_v0  ;;  %v305_v3 = vshrl.u32 %v296_v1, 16  ;;  %v298_v4 = vld [vmem:[#allocation3 + $0x8] sm:$0xf]  ;;  %v313_v5 = vshrl.u32 %v297_v2, 16 }
  0x3c   : > { %275 = vst.msk [vmem:[#allocation2] sm:$0xf] %vm274_vm0, %v2738_v0  ;;  %vm276_vm1 = vcmask 122880   ;;  %v321_v6 = vshrl.u32 %v298_v4, 16  ;;  %v299_v7 = vld [vmem:[#allocation3 + $0xc] sm:$0xf] }
  0x3d   : > { %280 = vst.msk [vmem:[#allocation2 + $0x10] sm:$0xf] %vm274_vm0, %v2738_v0  ;;  %v307_v8 = vrot.slane %v305_v3, 7  ;;  %v308_v9 = vshll.u32 %v296_v1, 16  ;;  %vm386_vm2 = vsmask.f32 7938 }
  0x3e   : > { %282 = vst.msk [vmem:[#allocation2 + $0x18] sm:$0xf] %vm274_vm0, %v2738_v0  ;;  %v316_v10 = vshll.u32 %v297_v2, 16  ;;  %v315_v11 = vrot.slane %v313_v5, 7  ;;  %v329_v12 = vshrl.u32 %v299_v7, 16  ;;  %v323_v14 = vrot.slane %v321_v6, 7  ;;  %vm2929_vm4 = vmand %vm274_vm0, %vm386_vm2 }
  0x3f   : > { %284 = vst.msk [vmem:[#allocation2 + $0x20] sm:$0xf] %vm274_vm0, %v2738_v0  ;;  %v300_v13 = vld [vmem:[#allocation3 + $0x10] sm:$0xf]  ;;  %vm392_vm3 = vsmask.f32 256  ;;  %v310_v17 = vor.u32 %v308_v9, %v307_v8 }
  0x40   : > { %286 = vst.msk [vmem:[#allocation2 + $0x28] sm:$0xf] %vm274_vm0, %v2738_v0  ;;  %v311_v15 = vrot.slane %v307_v8, 4  ;;  %v301_v16 = vld [vmem:[#allocation3 + $0x14] sm:$0xf]  ;;  %v324_v19 = vshll.u32 %v298_v4, 16  ;;  %v318_v22 = vor.u32 %v316_v10, %v315_v11  ;;  %vm2937_vm5 = vmand %vm276_vm1, %vm392_vm3 }
  0x41   : > { %288 = vst.msk [vmem:[#allocation2 + $0x30] sm:$0xf] %vm274_vm0, %v2738_v0  ;;  %v337_v20 = vshrl.u32 %v300_v13, 16  ;;  %v331_v23 = vrot.slane %v329_v12, 7  ;;  %v332_v24 = vshll.u32 %v299_v7, 16  ;;  %v319_v27 = vrot.slane %v315_v11, 4 }
  0x42   : > { %290 = vst.msk [vmem:[#allocation2 + $0x38] sm:$0xf] %vm274_vm0, %v2738_v0  ;;  %v388_v18 = vld [vmem:[#allocation2 + $0x8] sm:$0xf]  ;;  %v327_v28 = vrot.slane %v323_v14, 4  ;;  %v340_v29 = vshll.u32 %v300_v13, 16  ;;  %v326_v35 = vor.u32 %v324_v19, %v323_v14 }
  0x43   : > { %292 = vst.msk [vmem:[#allocation2 + $0x40] sm:$0xf] %vm274_vm0, %v2738_v0  ;;  %v302_v25 = vld [vmem:[#allocation3 + $0x18] sm:$0xf]  ;;  %v345_v30 = vshrl.u32 %v301_v16, 16  ;;  %v389_v33 = vsel %vm2929_vm4, %v310_v17, %v388_v18  ;;  %v339_v36 = vrot.slane %v337_v20, 7  ;;  %v334_v44 = vor.u32 %v332_v24, %v331_v23 }
  0x44   : > { %294 = vst.msk [vmem:[#allocation2 + $0x48] sm:$0xf] %vm274_vm0, %v2738_v0  ;;  %v397_v31 = vld [vmem:[#allocation2 + $0x10] sm:$0xf]  ;;  %v303_v32 = vld [vmem:[#allocation3 + $0x1c] sm:$0xf] }
  0x45   : > { %279 = vst.msk [vmem:[#allocation2 + $0xc] sm:$0x1] %vm276_vm1, %v2738_v0  ;;  %v353_v37 = vshrl.u32 %v302_v25, 16  ;;  %v403_v39 = vld [vmem:[#allocation2 + $0x18] sm:$0xf]  ;;  %v335_v40 = vrot.slane %v331_v23, 4  ;;  %v398_v42 = vsel %vm2929_vm4, %v318_v22, %v397_v31  ;;  %v342_v52 = vor.u32 %v340_v29, %v339_v36 }
  0x46   : > { %277 = vst.msk [vmem:[#allocation2 + $0x4] sm:$0x1] %vm276_vm1, %v2738_v0  ;;  %v348_v41 = vshll.u32 %v301_v16, 16  ;;  %v347_v45 = vrot.slane %v345_v30, 7  ;;  %v361_v46 = vshrl.u32 %v303_v32, 16  ;;  %v404_v50 = vsel %vm2929_vm4, %v326_v35, %v403_v39 }
  0x47   : > { %281 = vst.msk [vmem:[#allocation2 + $0x14] sm:$0x1] %vm276_vm1, %v2738_v0  ;;  %v409_v49 = vld [vmem:[#allocation2 + $0x20] sm:$0xf]  ;;  %v355_v53 = vrot.slane %v353_v37, 7  ;;  %v356_v54 = vshll.u32 %v302_v25, 16 }
  0x48   : > { %283 = vst.msk [vmem:[#allocation2 + $0x1c] sm:$0x1] %vm276_vm1, %v2738_v0  ;;  %v415_v56 = vld [vmem:[#allocation2 + $0x28] sm:$0xf]  ;;  %v343_v57 = vrot.slane %v339_v36, 4  ;;  %v410_v58 = vsel %vm2929_vm4, %v334_v44, %v409_v49  ;;  %v350_v60 = vor.u32 %v348_v41, %v347_v45  ;;  %v363_v61 = vrot.slane %v361_v46, 7 }
  0x49   : > { %285 = vst.msk [vmem:[#allocation2 + $0x24] sm:$0x1] %vm276_vm1, %v2738_v0  ;;  %v364_v62 = vshll.u32 %v303_v32, 16  ;;  %v351_v1 = vrot.slane %v347_v45, 4  ;;  %v416_v2 = vsel %vm2929_vm4, %v342_v52, %v415_v56  ;;  %v358_v4 = vor.u32 %v356_v54, %v355_v53  ;;  %v427_v6 = vld [vmem:[#allocation2 + $0x38] sm:$0xf] }
  0x4a   : > { %287 = vst.msk [vmem:[#allocation2 + $0x2c] sm:$0x1] %vm276_vm1, %v2738_v0  ;;  %v359_v7 = vrot.slane %v355_v53, 4  ;;  %v433_v12 = vld [vmem:[#allocation2 + $0x40] sm:$0xf]  ;;  %v367_v13 = vrot.slane %v363_v61, 4 }
  0x4b   : > { %289 = vst.msk [vmem:[#allocation2 + $0x34] sm:$0x1] %vm276_vm1, %v2738_v0  ;;  %v366_v10 = vor.u32 %v364_v62, %v363_v61  ;;  %v428_v14 = vsel %vm2929_vm4, %v358_v4, %v427_v6 }
  0x4c   : > { %291 = vst.msk [vmem:[#allocation2 + $0x3c] sm:$0x1] %vm276_vm1, %v2738_v0  ;;  %v394_v34 = vld [vmem:[#allocation2 + $0xc] sm:$0x1] }
  0x4d   : > { %293 = vst.msk [vmem:[#allocation2 + $0x44] sm:$0x1] %vm276_vm1, %v2738_v0  ;;  %v395_v38 = vsel %vm2937_vm5, %v311_v15, %v394_v34  ;;  %v434_v17 = vsel %vm2929_vm4, %v366_v10, %v433_v12 }
  0x4e   : > { %295 = vst.msk [vmem:[#allocation2 + $0x4c] sm:$0x1] %vm276_vm1, %v2738_v0  ;;  %v400_v43 = vld [vmem:[#allocation2 + $0x14] sm:$0x1]  ;;  %v421_v0 = vld [vmem:[#allocation2 + $0x30] sm:$0xf] }
  0x4f   : > { %390 = vst [vmem:[#allocation2 + $0x8] sm:$0xf] %v389_v33  ;;  %v401_v47 = vsel %vm2937_vm5, %v319_v27, %v400_v43  ;;  %v406_v48 = vld [vmem:[#allocation2 + $0x1c] sm:$0x1]  ;;  %v422_v8 = vsel %vm2929_vm4, %v350_v60, %v421_v0 }
  0x50   : > { %396 = vst [vmem:[#allocation2 + $0xc] sm:$0x1] %v395_v38  ;;  %v412_v51 = vld [vmem:[#allocation2 + $0x24] sm:$0x1]  ;;  %v407_v55 = vsel %vm2937_vm5, %v327_v28, %v406_v48 }
  0x51   : > { %399 = vst [vmem:[#allocation2 + $0x10] sm:$0xf] %v398_v42  ;;  %v418_v59 = vld [vmem:[#allocation2 + $0x2c] sm:$0x1]  ;;  %v413_v63 = vsel %vm2937_vm5, %v335_v40, %v412_v51 }
  0x52   : > { %402 = vst [vmem:[#allocation2 + $0x14] sm:$0x1] %v401_v47  ;;  %v424_v3 = vld [vmem:[#allocation2 + $0x34] sm:$0x1]  ;;  %v419_v5 = vsel %vm2937_vm5, %v343_v57, %v418_v59 }
  0x53   : > { %405 = vst [vmem:[#allocation2 + $0x18] sm:$0xf] %v404_v50  ;;  %v430_v9 = vld [vmem:[#allocation2 + $0x3c] sm:$0x1]  ;;  %v425_v11 = vsel %vm2937_vm5, %v351_v1, %v424_v3 }
  0x54   : > { %408 = vst [vmem:[#allocation2 + $0x1c] sm:$0x1] %v407_v55  ;;  %v436_v15 = vld [vmem:[#allocation2 + $0x44] sm:$0x1]  ;;  %v431_v16 = vsel %vm2937_vm5, %v359_v7, %v430_v9 }
  0x55   : > { %411 = vst [vmem:[#allocation2 + $0x20] sm:$0xf] %v410_v58  ;;  %v437_v18 = vsel %vm2937_vm5, %v367_v13, %v436_v15 }
  0x56   : > { %414 = vst [vmem:[#allocation2 + $0x24] sm:$0x1] %v413_v63 }
  0x57   : > { %417 = vst [vmem:[#allocation2 + $0x28] sm:$0xf] %v416_v2 }
  0x58   : > { %420 = vst [vmem:[#allocation2 + $0x2c] sm:$0x1] %v419_v5 }
  0x59   : > { %423 = vst [vmem:[#allocation2 + $0x30] sm:$0xf] %v422_v8 }
  0x5a   : > { %426 = vst [vmem:[#allocation2 + $0x34] sm:$0x1] %v425_v11 }
  0x5b   : > { %429 = vst [vmem:[#allocation2 + $0x38] sm:$0xf] %v428_v14 }
  0x5c   : > { %432 = vst [vmem:[#allocation2 + $0x3c] sm:$0x1] %v431_v16 }
  0x5d   : > { %435 = vst [vmem:[#allocation2 + $0x40] sm:$0xf] %v434_v17 }
  0x5e   : > { %438 = vst [vmem:[#allocation2 + $0x44] sm:$0x1] %v437_v18 }
  0x5f PF: > { %v2198_v19 = vld [vmem:[%s2884_s30 + $0x10] sm:$0xf]  ;;  %v2439_v20 = vld [vmem:[%s2884_s30 + $0x14] sm:$0xf0]  ;;  %v2438_v22 = vld [vmem:[%s2884_s30 + $0x14] sm:$0xf] }
  0x60   : > { %v2199_v23 = vor.u32 %v2439_v20, %v2198_v19  ;;  %v2200_v24 = vld [vmem:[%s2884_s30 + $0x18] sm:$0xf0]  ;;  %v439_v25 = vld [vmem:[#allocation2] sm:$0xf]  ;;  %v440_v21 = vld [vmem:[#allocation2 + $0x8] sm:$0xf] }
  0x61   : > { %v2203_v27 = vor.u32 %v2438_v22, %v2200_v24  ;;  %v2985_v28 = vld [vmem:[#allocation2 + $0x4] sm:$0x1]  ;;  %v2987_v26 = vld [vmem:[#allocation2 + $0xc] sm:$0x1]  ;;  %vm457_vm6 = vsmask.f32 3328 }
  0x62   : > { %617 = vmatpush.bf16.msra.mxu0 %v2199_v23  ;;  %2463 = vmatpush.bf16.msra.mxu2 %v2199_v23  ;;  %v461_v29 = vshrl.u32 %v439_v25, 16  ;;  %v464_v30 = vshll.u32 %v439_v25, 16  ;;  %v470_v31 = vshll.u32 %v2985_v28, 16  ;;  %v475_v32 = vshrl.u32 %v440_v21, 16  ;;  %v443_v35 = vld [vmem:[#allocation2 + $0x20] sm:$0xf] }
  0x63   : > { %646 = vmatpush.bf16.msra.mxu1 %v2203_v27  ;;  %2464 = vmatpush.bf16.msra.mxu3 %v2203_v27  ;;  %v478_v33 = vshll.u32 %v440_v21, 16  ;;  %v484_v34 = vshll.u32 %v2987_v26, 16  ;;  %vm458_vm7 = vsmask.f32 7440  ;;  %v444_v38 = vld [vmem:[#allocation2 + $0x28] sm:$0xf] }
  0x64   : > { %v463_v36 = vrot.slane %v461_v29, 4  ;;  %v466_v37 = vrot.slane %v464_v30, 5  ;;  %v472_v39 = vrot.slane %v470_v31, 5  ;;  %v477_v40 = vrot.slane %v475_v32, 4  ;;  %v2991_v43 = vld [vmem:[#allocation2 + $0x24] sm:$0x1]  ;;  %vm2998_vm9 = vmor %vm457_vm6, %vm458_vm7 }
  0x65   : > { %v480_v41 = vrot.slane %v478_v33, 5  ;;  %v486_v42 = vrot.slane %v484_v34, 5  ;;  %vm597_vm8 = vcmask 130048   ;;  %v2993_v45 = vld [vmem:[#allocation2 + $0x2c] sm:$0x1]  ;;  %v517_v46 = vshrl.u32 %v443_v35, 16 }
  0x66   : > { %v467_v44 = vor.u32 %v466_v37, %v463_v36  ;;  %v520_v47 = vshll.u32 %v443_v35, 16  ;;  %v526_v48 = vshll.u32 %v2991_v43, 16  ;;  %v531_v51 = vshrl.u32 %v444_v38, 16  ;;  %v2230_v54 = vld [vmem:[%s2884_s30] sm:$0xf]  ;;  %s2462_s10 = sshll.u32 %s2722_s15, 4 }
  0x67   : > { %v481_v50 = vor.u32 %v480_v41, %v477_v40  ;;  %v534_v52 = vshll.u32 %v444_v38, 16  ;;  %v540_v53 = vshll.u32 %v2993_v45, 16  ;;  %v519_v56 = vrot.slane %v517_v46, 4  ;;  %v2437_v59 = vld [vmem:[%s2884_s30 + $0x4] sm:$0xf0]  ;;  %s2058_s5 = scalar_lea.hbm %s3556_s3, %s2462_s10  ;;  %s2059_s15 = sshll.u32 %s2894_s29, 4  ;;  %s2060_s15 = int_to_ptr.vmem [resolvable:$true] %s2059_s15 }
  0x68   : > { %v468_v55 = vrot.slane %v467_v44, 4  ;;  %v522_v57 = vrot.slane %v520_v47, 5  ;;  %v528_v58 = vrot.slane %v526_v48, 5  ;;  %v533_v61 = vrot.slane %v531_v51, 4  ;;  %v2436_v0 = vld [vmem:[%s2884_s30 + $0x4] sm:$0xf] }
  0x69   : > { %v482_v60 = vrot.slane %v481_v50, 4  ;;  %v536_v62 = vrot.slane %v534_v52, 5  ;;  %v542_v63 = vrot.slane %v540_v53, 5  ;;  %v2231_v3 = vor.u32 %v2437_v59, %v2230_v54  ;;  %v2232_v4 = vld [vmem:[%s2884_s30 + $0x8] sm:$0xf0]  ;;  %s2061_s7 = sshll.u32 %s2058_s5, 4  ;;  %s2062_s7 = int_to_ptr.hbm [resolvable:$true] %s2061_s7 }
  0x6a   : > { %v473_v1 = vsel %vm2998_vm9, %v468_v55, %v472_v39  ;;  %v523_v2 = vor.u32 %v522_v57, %v519_v56  ;;  %v2256_v5 = vld [vmem:[%s2884_s30 + $0x20] sm:$0xf]  ;;  %v2441_v6 = vld [vmem:[%s2884_s30 + $0x24] sm:$0xf0]  ;;  %v2235_v10 = vor.u32 %v2436_v0, %v2232_v4  ;;  %v2440_v11 = vld [vmem:[%s2884_s30 + $0x24] sm:$0xf] }
  0x6b   : > { %v487_v7 = vsel %vm2998_vm9, %v482_v60, %v486_v42  ;;  %v575_v8 = vunpack.c.l.b16 %v473_v1  ;;  %v537_v9 = vor.u32 %v536_v62, %v533_v61  ;;  %v2258_v12 = vld [vmem:[%s2884_s30 + $0x28] sm:$0xf0]  ;;  %v441_v13 = vld [vmem:[#allocation2 + $0x10] sm:$0xf]  ;;  %717 = vmatpush.bf16.msrb.mxu2 %v2231_v3  ;;  %v2257_v16 = vor.u32 %v2441_v6, %v2256_v5  ;;  %v442_v18 = vld [vmem:[#allocation2 + $0x18] sm:$0xf] }
  0x6c   : > { %v576_v14 = vunpack.c.l.b16 %v487_v7  ;;  %v524_v15 = vrot.slane %v523_v2, 4  ;;  %v2261_v17 = vor.u32 %v2440_v11, %v2258_v12  ;;  %v3015_v19 = vld [vmem:[#allocation2 + $0x14] sm:$0x1]  ;;  %746 = vmatpush.bf16.msrb.mxu3 %v2235_v10  ;;  %v489_v22 = vshrl.u32 %v441_v13, 16  ;;  %v3020_v27 = vld [vmem:[#allocation2 + $0x1c] sm:$0x1] }
  0x6d   : > { %v538_v20 = vrot.slane %v537_v9, 4  ;;  %v492_v23 = vshll.u32 %v441_v13, 16  ;;  %v498_v24 = vshll.u32 %v3015_v19, 16  ;;  %871 = vmatpush.bf16.msrb.mxu0 %v2257_v16  ;;  %v503_v29 = vshrl.u32 %v442_v18, 16  ;;  %v445_v31 = vld [vmem:[#allocation2 + $0x30] sm:$0xf] }
  0x6e   : > { %v583_v25 = vpack.c.b16 %v576_v14, %v575_v8  ;;  %v529_v21 = vsel %vm2998_vm9, %v524_v15, %v528_v58  ;;  %900 = vmatpush.bf16.msrb.mxu1 %v2261_v17  ;;  %v506_v30 = vshll.u32 %v442_v18, 16  ;;  %v491_v34 = vrot.slane %v489_v22, 4  ;;  %v446_v36 = vld [vmem:[#allocation2 + $0x38] sm:$0xf]  ;;  %v3024_v37 = vld [vmem:[#allocation2 + $0x34] sm:$0x1] }
  0x6f   : > { %v543_v32 = vsel %vm2998_vm9, %v538_v20, %v542_v63  ;;  %v579_v33 = vunpack.c.l.b16 %v529_v21  ;;  %v494_v35 = vrot.slane %v492_v23, 5  ;;  %v500_v39 = vrot.slane %v498_v24, 5  ;;  %v3029_v51 = vld [vmem:[#allocation2 + $0x3c] sm:$0x1]  ;;  %v2290_v61 = vld [vmem:[%s2884_s30 + $0x30] sm:$0xf] }
  0x70   : > { %2204 = vmatmul.msk.bf16.vlgmr.msra.gmra.mxu0 %vm597_vm8, %v583_v25  ;;  %v580_v38 = vunpack.c.l.b16 %v543_v32  ;;  %2208 = vmatmul.msk.bf16.vlgmr.msra.gmra.mxu1 %vm597_vm8, %v583_v25  ;;  %v505_v40 = vrot.slane %v503_v29, 4  ;;  %v508_v41 = vrot.slane %v506_v30, 5  ;;  %v512_v44 = vshll.u32 %v3020_v27, 16  ;;  %v2447_v2 = vld [vmem:[%s2884_s30 + $0x34] sm:$0xf0]  ;;  %s2045_s8 = scalar_lea.sflag [#allocation5], %s2881_s28 }
  0x71   : > { %v495_v42 = vor.u32 %v494_v35, %v491_v34  ;;  %v545_v46 = vshrl.u32 %v445_v31, 16  ;;  %v548_v47 = vshll.u32 %v445_v31, 16  ;;  %v554_v52 = vshll.u32 %v3024_v37, 16  ;;  %v2446_v3 = vld [vmem:[%s2884_s30 + $0x34] sm:$0xf]  ;;  %s2658_s9 = sshra.s32 %s2062_s7, 4  ;;  %s2659_s9 = int_to_ptr.hbm [resolvable:$true] %s2658_s9 }
  0x72   : > { %v585_v48 = vpack.c.b16 %v580_v38, %v579_v33  ;;  %v509_v50 = vor.u32 %v508_v41, %v505_v40  ;;  %v559_v53 = vshrl.u32 %v446_v36, 16  ;;  %v514_v55 = vrot.slane %v512_v44, 5  ;;  %v2292_v6 = vld [vmem:[%s2884_s30 + $0x38] sm:$0xf0]  ;;  %v2308_v7 = vld [vmem:[%s2884_s30 + $0x40] sm:$0xf]  ;;  %p2665_p11 = scmp.lt.s32.totalorder %s2659_s9, %s3556_s3 }
  0x73   : > { %v496_v54 = vrot.slane %v495_v42, 4  ;;  %v547_v56 = vrot.slane %v545_v46, 4  ;;  %v550_v57 = vrot.slane %v548_v47, 5  ;;  %v562_v60 = vshll.u32 %v446_v36, 16  ;;  %v2449_v10 = vld [vmem:[%s2884_s30 + $0x44] sm:$0xf0] }
  0x74   : > { %2206 = vmatmul.msk.bf16.vlgmr.msra.gmra.mxu2 %vm597_vm8, %v585_v48  ;;  %2210 = vmatmul.msk.bf16.vlgmr.msra.gmra.mxu3 %vm597_vm8, %v585_v48  ;;  %v510_v58 = vrot.slane %v509_v50, 4  ;;  %v561_v59 = vrot.slane %v559_v53, 4  ;;  %v556_v0 = vrot.slane %v554_v52, 5  ;;  %v568_v1 = vshll.u32 %v3029_v51, 16  ;;  %v2448_v15 = vld [vmem:[%s2884_s30 + $0x44] sm:$0xf] }
  0x75   : > { %v501_v62 = vsel %vm2998_vm9, %v496_v54, %v500_v39  ;;  %v551_v63 = vor.u32 %v550_v57, %v547_v56  ;;  %v564_v5 = vrot.slane %v562_v60, 5  ;;  %v2291_v14 = vor.u32 %v2447_v2, %v2290_v61  ;;  %v2310_v16 = vld [vmem:[%s2884_s30 + $0x48] sm:$0xf0]  ;;  %v768_v30 = vld [vmem:[#allocation2] sm:$0xe]  ;;  %s2660_s11 = scalar_lea.hbm %s2659_s9, 128 }
  0x76   : > { %v515_v4 = vsel %vm2998_vm9, %v510_v58, %v514_v55  ;;  %v577_v8 = vunpack.c.l.b16 %v501_v62  ;;  %v570_v13 = vrot.slane %v568_v1, 5  ;;  %v2295_v18 = vor.u32 %v2446_v3, %v2292_v6  ;;  %v769_v31 = vld [vmem:[#allocation2 + $0x8] sm:$0xe]  ;;  %v770_v46 = vld [vmem:[#allocation2 + $0x10] sm:$0xe]  ;;  %p2661_p8 = scmp.ne.s32.totalorder %s2659_s9, %s2660_s11  ;;  %s2664_s22 = scalar_lea.hbm %s3556_s3, 256 }
  0x77   : > { %v552_v9 = vrot.slane %v551_v63, 4  ;;  %v578_v11 = vunpack.c.l.b16 %v515_v4  ;;  %v565_v12 = vor.u32 %v564_v5, %v561_v59  ;;  %v2309_v20 = vor.u32 %v2449_v10, %v2308_v7  ;;  %999 = vmatpush.bf16.msra.mxu2 %v2291_v14  ;;  %v2432_v44 = vld [vmem:[#allocation2 + $0x4] sm:$0xf0]  ;;  %v771_v47 = vld [vmem:[#allocation2 + $0x18] sm:$0xe]  ;;  %p2666_p12 = scmp.lt.s32.totalorder %s2664_s22, %s2660_s11 }
  0x78   : > { %1028 = vmatpush.bf16.msra.mxu3 %v2295_v18  ;;  %v2313_v23 = vor.u32 %v2448_v15, %v2310_v16  ;;  %vm792_vm10 = vcmask 1042432   ;;  %vm793_vm11 = vcmask 1046532   ;;  %v797_v33 = vrot.slane %v2985_v28, 5  ;;  %v2218_v60 = vld [vmem:[#allocation2 + $0x10] sm:$0xf]  ;;  %p2662_p9 = pnand %p2661_p8, %p2844_p0 }
  0x79   : > { %v557_v17 = vsel %vm2998_vm9, %v552_v9, %v556_v0  ;;  %v566_v22 = vrot.slane %v565_v12, 4  ;;  %1238 = vmatpush.bf16.msra.mxu0 %v2309_v20  ;;  %v584_v24 = vpack.c.b16 %v578_v11, %v577_v8  ;;  %v801_v34 = vrot.slane %v2987_v26, 5  ;;  %vm3055_vm12 = vmor %vm792_vm10, %vm793_vm11  ;;  %v2214_v26 = vld [vmem:[#allocation2] sm:$0xf]  ;;  %v2433_v61 = vld [vmem:[#allocation2 + $0x14] sm:$0xf0]  ;;  %p2667_p13 = por %p2666_p12, %p2665_p11 }
  0x7a   : > { %v581_v21 = vunpack.c.l.b16 %v557_v17  ;;  %1267 = vmatpush.bf16.msra.mxu1 %v2313_v23  ;;  %v2244_v35 = vrot.slane %v768_v30, 9  ;;  %v2245_v36 = vrot.slane %v769_v31, 9  ;;  %v2215_v48 = vor.u32 %v2432_v44, %v2214_v26  ;;  %v772_v62 = vld [vmem:[#allocation2 + $0x20] sm:$0xe]  ;;  %v2434_v9 = vld [vmem:[#allocation2 + $0x24] sm:$0xf0]  ;;  %p2663_p10 = pneg %p2662_p9 }
  0x7b   : > { %v571_v25 = vsel %vm2998_vm9, %v566_v22, %v570_v13  ;;  %v2246_v50 = vrot.slane %v770_v46, 9  ;;  %v805_v52 = vrot.slane %v3015_v19, 5  ;;  %v2247_v53 = vrot.slane %v771_v47, 9  ;;  %v773_v19 = vld [vmem:[#allocation2 + $0x28] sm:$0xe] }
  0x7c   : > { %v582_v29 = vunpack.c.l.b16 %v571_v25  ;;  %v798_v39 = vsel %vm3055_vm12, %v2244_v35, %v797_v33  ;;  %v802_v40 = vsel %vm3055_vm12, %v2245_v36, %v801_v34  ;;  %v809_v54 = vrot.slane %v3020_v27, 5  ;;  %v2222_v8 = vld [vmem:[#allocation2 + $0x20] sm:$0xf]  ;;  %v774_v10 = vld [vmem:[#allocation2 + $0x30] sm:$0xe]  ;;  %p2668_p4 = pnand %p2667_p13, %p2663_p10 }
  0x7d   : > { %v830_v41 = vunpack.c.l.b16 %v798_v39  ;;  %v831_v28 = vunpack.c.l.b16 %v802_v40  ;;  %v806_v55 = vsel %vm3055_vm12, %v2246_v50, %v805_v52  ;;  %v2219_v63 = vor.u32 %v2433_v61, %v2218_v60  ;;  %v1068_v12 = vld [vmem:[#allocation2 + $0x10] sm:$0xf]  ;;  %v2450_v25 = vld [vmem:[%s2884_s30 + $0x54] sm:$0xf]  ;;  %v2457_v31 = vld [vmem:[%s2884_s30 + $0x64] sm:$0xf0] }
  0x7e   : > { %v586_v32 = vpack.c.b16 %v582_v29, %v581_v21  ;;  %v810_v56 = vsel %vm3055_vm12, %v2247_v53, %v809_v54  ;;  %v832_v57 = vunpack.c.l.b16 %v806_v55  ;;  %v2248_v27 = vrot.slane %v772_v62, 9  ;;  %v2334_v23 = vld [vmem:[%s2884_s30 + $0x50] sm:$0xf]  ;;  %v2336_v29 = vld [vmem:[%s2884_s30 + $0x58] sm:$0xf0] }
  0x7f   : > { %v838_v42 = vpack.c.b16 %v831_v28, %v830_v41  ;;  %v833_v58 = vunpack.c.l.b16 %v810_v56  ;;  %v813_v0 = vrot.slane %v2991_v43, 5  ;;  %v2249_v1 = vrot.slane %v773_v19, 9  ;;  %v775_v43 = vld [vmem:[#allocation2 + $0x38] sm:$0xe]  ;;  %v2368_v30 = vld [vmem:[%s2884_s30 + $0x60] sm:$0xf] }
  0x80   : > { %2205 = vmatmul.msk.bf16.gmra.mxu0 %vm597_vm8, %v584_v24  ;;  %2209 = vmatmul.msk.bf16.gmra.mxu1 %vm597_vm8, %v584_v24  ;;  %v817_v2 = vrot.slane %v2993_v45, 5  ;;  %v2223_v11 = vor.u32 %v2434_v9, %v2222_v8  ;;  %v1066_v45 = vld [vmem:[#allocation2 + $0x8] sm:$0xf]  ;;  %v2250_v13 = vrot.slane %v774_v10, 9  ;;  %v821_v14 = vrot.slane %v3024_v37, 5 }
  0x81   : > { %v839_v59 = vpack.c.b16 %v833_v58, %v832_v57  ;;  %v814_v3 = vsel %vm3055_vm12, %v2248_v27, %v813_v0  ;;  %v2251_v15 = vrot.slane %v775_v43, 9  ;;  %v825_v16 = vrot.slane %v3029_v51, 5  ;;  %v2451_v24 = vld [vmem:[%s2884_s30 + $0x54] sm:$0xf0]  ;;  %v2456_v34 = vld [vmem:[%s2884_s30 + $0x64] sm:$0xf] }
  0x82   : > { %v818_v4 = vsel %vm3055_vm12, %v2249_v1, %v817_v2  ;;  %v834_v5 = vunpack.c.l.b16 %v814_v3  ;;  %v1083_v17 = vshrl.u32 %v1066_v45, 16  ;;  %v1086_v18 = vshll.u32 %v1066_v45, 16  ;;  %v2370_v35 = vld [vmem:[%s2884_s30 + $0x68] sm:$0xf0]  ;;  %v3105_v46 = vld [vmem:[#allocation2 + $0x14] sm:$0x1] }
  0x83   : > { %v835_v6 = vunpack.c.l.b16 %v818_v4  ;;  %v1097_v20 = vshrl.u32 %v1068_v12, 16  ;;  %v1100_v22 = vshll.u32 %v1068_v12, 16  ;;  %v822_v37 = vsel %vm3055_vm12, %v2250_v13, %v821_v14  ;;  %v3103_v44 = vld [vmem:[#allocation2 + $0xc] sm:$0x1]  ;;  %v2435_v50 = vld [vmem:[#allocation2 + $0x34] sm:$0xf0] }
  0x84   : > { %2207 = vmatmul.msk.bf16.gmra.mxu2 %vm597_vm8, %v586_v32  ;;  %2211 = vmatmul.msk.bf16.gmra.mxu3 %vm597_vm8, %v586_v32  ;;  %v826_v21 = vsel %vm3055_vm12, %v2251_v15, %v825_v16  ;;  %v2335_v51 = vor.u32 %v2451_v24, %v2334_v23  ;;  %v2339_v32 = vor.u32 %v2450_v25, %v2336_v29  ;;  %v836_v39 = vunpack.c.l.b16 %v822_v37  ;;  %v1070_v57 = vld [vmem:[#allocation2 + $0x18] sm:$0xf]  ;;  %v1072_v58 = vld [vmem:[#allocation2 + $0x20] sm:$0xf]  ;;  %v3117_v9 = vld [vmem:[#allocation2 + $0x1c] sm:$0x1] }
  0x85   : > { %v840_v7 = vpack.c.b16 %v835_v6, %v834_v5  ;;  %v2369_v33 = vor.u32 %v2457_v31, %v2368_v30  ;;  %v2373_v36 = vor.u32 %v2456_v34, %v2370_v35  ;;  %v837_v40 = vunpack.c.l.b16 %v826_v21  ;;  %v3119_v10 = vld [vmem:[#allocation2 + $0x24] sm:$0x1]  ;;  %v2274_v14 = vld [vmem:[#allocation2 + $0x8] sm:$0xf]  ;;  %v2442_v15 = vld [vmem:[#allocation2 + $0xc] sm:$0xf0] }
  0x86   : > { %v1085_v41 = vrot.slane %v1083_v17, 4  ;;  %v1088_v28 = vrot.slane %v1086_v18, 5  ;;  %v1102_v26 = vrot.slane %v1100_v22, 5  ;;  %v1092_v53 = vshll.u32 %v3103_v44, 16  ;;  %v1074_v23 = vld [vmem:[#allocation2 + $0x28] sm:$0xf] }
  0x87   : > { %v841_v47 = vpack.c.b16 %v837_v40, %v836_v39  ;;  %v1106_v55 = vshll.u32 %v3105_v46, 16  ;;  %v1111_v19 = vshrl.u32 %v1070_v57, 16  ;;  %v1125_v27 = vshrl.u32 %v1072_v58, 16  ;;  %v1076_v24 = vld [vmem:[#allocation2 + $0x30] sm:$0xf] }
  0x88   : > { %v1089_v52 = vor.u32 %v1088_v28, %v1085_v41  ;;  %v1094_v60 = vrot.slane %v1092_v53, 5  ;;  %v1128_v0 = vshll.u32 %v1072_v58, 16  ;;  %v1134_v12 = vshll.u32 %v3119_v10, 16  ;;  %v3131_v39 = vld [vmem:[#allocation2 + $0x2c] sm:$0x1] }
  0x89   : > { %v1108_v62 = vrot.slane %v1106_v55, 5  ;;  %v1113_v3 = vrot.slane %v1111_v19, 4  ;;  %v1127_v5 = vrot.slane %v1125_v27, 4  ;;  %v2275_v22 = vor.u32 %v2442_v15, %v2274_v14  ;;  %v3133_v40 = vld [vmem:[#allocation2 + $0x34] sm:$0x1] }
  0x8a   : > { %v1130_v6 = vrot.slane %v1128_v0, 5  ;;  %v1139_v21 = vshrl.u32 %v1074_v23, 16  ;;  %v1153_v29 = vshrl.u32 %v1076_v24, 16  ;;  %v1156_v30 = vshll.u32 %v1076_v24, 16  ;;  %v2278_v28 = vld [vmem:[#allocation2 + $0x18] sm:$0xf] }
  0x8b   : > { %v1080_v58 = vld [vmem:[#allocation2 + $0x40] sm:$0xf]  ;;  %v2459_v24 = vld [vmem:[%s2884_s30 + $0x74] sm:$0xf0] }
  0x8c   : > { %v1131_v45 = vor.u32 %v1130_v6, %v1127_v5  ;;  %v1155_v35 = vrot.slane %v1153_v29, 4  ;;  %v1181_v19 = vshrl.u32 %v1080_v58, 16  ;;  %v3145_v5 = vld [vmem:[#allocation2 + $0x3c] sm:$0x1]  ;;  %v3147_v6 = vld [vmem:[#allocation2 + $0x44] sm:$0x1] }
  0x8d   : > { %v1190_v15 = vshll.u32 %v3147_v6, 16 }
  0x8e   : > { %v1132_v18 = vrot.slane %v1131_v45, 4  ;;  %v2444_v45 = vld [vmem:[#allocation2 + $0x2c] sm:$0xf0] }
  0x90   : > { %2262 = vmatmul.msk.bf16.vlgmr.msrb.gmra.mxu0 %vm597_vm8, %v838_v42  ;;  %2266 = vmatmul.msk.bf16.vlgmr.msrb.gmra.mxu1 %vm597_vm8, %v838_v42  ;;  %v1099_v42 = vrot.slane %v1097_v20, 4  ;;  %v1136_v20 = vrot.slane %v1134_v12, 5 }
  0x91   : > { %1533 = vmatpush.bf16.msrb.mxu0 %v2369_v33  ;;  %1562 = vmatpush.bf16.msrb.mxu1 %v2373_v36  ;;  %v1141_v33 = vrot.slane %v1139_v21, 4  ;;  %v1158_v36 = vrot.slane %v1156_v30, 5 }
  0x92   : > { %v1103_v54 = vor.u32 %v1102_v26, %v1099_v42  ;;  %v1137_v37 = vsel %vm2998_vm9, %v1132_v18, %v1136_v20  ;;  %v2443_v42 = vld [vmem:[#allocation2 + $0x1c] sm:$0xf0] }
  0x94   : > { %2236 = vmatmul.msk.bf16.vlgmr.msrb.gmra.mxu2 %vm597_vm8, %v2215_v48  ;;  %2240 = vmatmul.msk.bf16.vlgmr.msrb.gmra.mxu3 %vm597_vm8, %v2215_v48  ;;  %v2226_v48 = vld [vmem:[#allocation2 + $0x30] sm:$0xf]  ;;  %v1104_v61 = vrot.slane %v1103_v54, 4 }
  0x95   : > { %1405 = vmatpush.bf16.msrb.mxu2 %v2335_v51  ;;  %1434 = vmatpush.bf16.msrb.mxu3 %v2339_v32  ;;  %v2227_v56 = vor.u32 %v2435_v50, %v2226_v48  ;;  %v1142_v51 = vshll.u32 %v1074_v23, 16  ;;  %v1200_v32 = vunpack.c.l.b16 %v1137_v37  ;;  %v1159_v48 = vor.u32 %v1158_v36, %v1155_v35  ;;  %v2386_v23 = vld [vmem:[%s2884_s30 + $0x70] sm:$0xf] }
  0x96   : > { %v1109_v2 = vsel %vm2998_vm9, %v1104_v61, %v1108_v62  ;;  %v1162_v50 = vshll.u32 %v3133_v40, 16  ;;  %v2387_v30 = vor.u32 %v2459_v24, %v2386_v23 }
  0x97   : > { %v1198_v8 = vunpack.c.l.b16 %v1109_v2  ;;  %v1144_v34 = vrot.slane %v1142_v51, 5  ;;  %v1160_v55 = vrot.slane %v1159_v48, 4 }
  0x99   : > { %v1145_v26 = vor.u32 %v1144_v34, %v1141_v33 }
  0x9b   : > { %v1146_v53 = vrot.slane %v1145_v26, 4 }
  0xa0   : > { %2263 = vmatmul.msk.bf16.gmra.mxu0 %vm597_vm8, %v839_v59  ;;  %2267 = vmatmul.msk.bf16.gmra.mxu1 %vm597_vm8, %v839_v59  ;;  %v1090_v59 = vrot.slane %v1089_v52, 4  ;;  %v2279_v52 = vor.u32 %v2443_v42, %v2278_v28  ;;  %v2461_v28 = vld [vmem:[%s2884_s30 + $0x84] sm:$0xf0]  ;;  %v2460_v42 = vld [vmem:[%s2884_s30 + $0x84] sm:$0xf] }
  0xa2   : > { %v1095_v1 = vsel %vm2998_vm9, %v1090_v59, %v1094_v60 }
  0xa4   : > { %2237 = vmatmul.msk.bf16.gmra.mxu2 %vm597_vm8, %v2219_v63  ;;  %2241 = vmatmul.msk.bf16.gmra.mxu3 %vm597_vm8, %v2219_v63  ;;  %v1114_v63 = vshll.u32 %v1070_v57, 16  ;;  %v1078_v57 = vld [vmem:[#allocation2 + $0x38] sm:$0xf] }
  0xa5   : > { %v1167_v61 = vshrl.u32 %v1078_v57, 16  ;;  %v1170_v62 = vshll.u32 %v1078_v57, 16 }
  0xa6   : > { %v1116_v4 = vrot.slane %v1114_v63, 5  ;;  %v1184_v63 = vshll.u32 %v1080_v58, 16 }
  0xa7   : > { %v1172_v2 = vrot.slane %v1170_v62, 5 }
  0xa8   : > { %v1117_v43 = vor.u32 %v1116_v4, %v1113_v3  ;;  %v1183_v3 = vrot.slane %v1181_v19, 4  ;;  %v1186_v4 = vrot.slane %v1184_v63, 5  ;;  %v1331_v63 = vrot.slane %v3103_v44, 5 }
  0xaa   : > { %v1118_v16 = vrot.slane %v1117_v43, 4  ;;  %v1187_v14 = vor.u32 %v1186_v4, %v1183_v3 }
  0xac   : > { %v1188_v20 = vrot.slane %v1187_v14, 4 }
  0xb0   : > { %2264 = vmatmul.msk.bf16.gmra.mxu0 %vm597_vm8, %v840_v7  ;;  %2268 = vmatmul.msk.bf16.gmra.mxu1 %vm597_vm8, %v840_v7  ;;  %v1197_v7 = vunpack.c.l.b16 %v1095_v1  ;;  %v1169_v1 = vrot.slane %v1167_v61, 4 }
  0xb2   : > { %v1205_v13 = vpack.c.b16 %v1198_v8, %v1197_v7  ;;  %v1173_v12 = vor.u32 %v1172_v2, %v1169_v1 }
  0xb4   : > { %2238 = vmatmul.msk.bf16.gmra.mxu2 %vm597_vm8, %v2223_v11  ;;  %2242 = vmatmul.msk.bf16.gmra.mxu3 %vm597_vm8, %v2223_v11  ;;  %v1120_v11 = vshll.u32 %v3117_v9, 16 }
  0xb6   : > { %v1122_v17 = vrot.slane %v1120_v11, 5  ;;  %v2282_v11 = vld [vmem:[#allocation2 + $0x28] sm:$0xf] }
  0xb8   : > { %v1123_v25 = vsel %vm2998_vm9, %v1118_v16, %v1122_v17  ;;  %v2283_v16 = vor.u32 %v2444_v45, %v2282_v11  ;;  %v1174_v17 = vrot.slane %v1173_v12, 4  ;;  %v2452_v11 = vld [vmem:[#allocation2 + $0x14] sm:$0xf0]  ;;  %v1347_v45 = vrot.slane %v3131_v39, 5 }
  0xb9   : > { %v1199_v31 = vunpack.c.l.b16 %v1123_v25  ;;  %v2458_v25 = vld [vmem:[%s2884_s30 + $0x74] sm:$0xf]  ;;  %v1351_v12 = vrot.slane %v3133_v40, 5 }
  0xbb   : > { %v1206_v41 = vpack.c.b16 %v1200_v32, %v1199_v31  ;;  %v2388_v31 = vld [vmem:[%s2884_s30 + $0x78] sm:$0xf0] }
  0xbc   : > { %v2391_v32 = vor.u32 %v2458_v25, %v2388_v31 }
  0xc0   : > { %2265 = vmatmul.msk.bf16.gmra.mxu0 %vm597_vm8, %v841_v47  ;;  %2269 = vmatmul.msk.bf16.gmra.mxu1 %vm597_vm8, %v841_v47  ;;  %v1148_v47 = vshll.u32 %v3131_v39, 16 }
  0xc2   : > { %v1150_v54 = vrot.slane %v1148_v47, 5  ;;  %v2414_v47 = vld [vmem:[%s2884_s30 + $0x88] sm:$0xf0] }
  0xc3   : > { %v2417_v48 = vor.u32 %v2460_v42, %v2414_v47 }
  0xc4   : > { %2239 = vmatmul.msk.bf16.gmra.mxu2 %vm597_vm8, %v2227_v56  ;;  %2243 = vmatmul.msk.bf16.gmra.mxu3 %vm597_vm8, %v2227_v56  ;;  %v1164_v56 = vrot.slane %v1162_v50, 5  ;;  %v1151_v59 = vsel %vm2998_vm9, %v1146_v53, %v1150_v54  ;;  %v2286_v54 = vld [vmem:[#allocation2 + $0x38] sm:$0xf] }
  0xc5   : > { %v1201_v27 = vunpack.c.l.b16 %v1151_v59  ;;  %v1305_v59 = vld [vmem:[#allocation2 + $0x8] sm:$0xe] }
  0xc6   : > { %v1165_v60 = vsel %vm2998_vm9, %v1160_v55, %v1164_v56  ;;  %v2445_v55 = vld [vmem:[#allocation2 + $0x3c] sm:$0xf0]  ;;  %v2322_v19 = vrot.slane %v1305_v59, 9  ;;  %v2453_v59 = vld [vmem:[#allocation2 + $0x24] sm:$0xf0] }
  0xc7   : > { %v1202_v0 = vunpack.c.l.b16 %v1165_v60  ;;  %v2287_v58 = vor.u32 %v2445_v55, %v2286_v54  ;;  %v1306_v60 = vld [vmem:[#allocation2 + $0x10] sm:$0xe] }
  0xc8   : > { %v1332_v3 = vsel %vm3055_vm12, %v2322_v19, %v1331_v63  ;;  %v1359_v19 = vrot.slane %v3147_v6, 5 }
  0xc9   : > { %v1207_v7 = vpack.c.b16 %v1202_v0, %v1201_v27  ;;  %v2323_v27 = vrot.slane %v1306_v60, 9  ;;  %v1335_v0 = vrot.slane %v3105_v46, 5  ;;  %v1364_v44 = vunpack.c.l.b16 %v1332_v3  ;;  %v1309_v46 = vld [vmem:[#allocation2 + $0x28] sm:$0xe] }
  0xcb   : > { %v1336_v4 = vsel %vm3055_vm12, %v2323_v27, %v1335_v0  ;;  %v1312_v0 = vld [vmem:[#allocation2 + $0x40] sm:$0xe] }
  0xd0   : > { %2314 = vmatmul.msk.bf16.vlgmr.msra.gmra.mxu0 %vm597_vm8, %v1205_v13  ;;  %2318 = vmatmul.msk.bf16.vlgmr.msra.gmra.mxu1 %vm597_vm8, %v1205_v13  ;;  %v1176_v13 = vshll.u32 %v3145_v5, 16 }
  0xd1   : > { %1968 = vmatpush.bf16.msra.mxu1 %v2417_v48 }
  0xd2   : > { %v1178_v18 = vrot.slane %v1176_v13, 5  ;;  %v1365_v13 = vunpack.c.l.b16 %v1336_v4 }
  0xd4   : > { %2296 = vmatmul.msk.bf16.vlgmr.msra.gmra.mxu2 %vm597_vm8, %v2275_v22  ;;  %2300 = vmatmul.msk.bf16.vlgmr.msra.gmra.mxu3 %vm597_vm8, %v2275_v22  ;;  %v1192_v22 = vrot.slane %v1190_v15, 5  ;;  %v1179_v51 = vsel %vm2998_vm9, %v1174_v17, %v1178_v18  ;;  %v1310_v15 = vld [vmem:[#allocation2 + $0x30] sm:$0xe]  ;;  %v2326_v18 = vrot.slane %v1309_v46, 9  ;;  %v1372_v40 = vpack.c.b16 %v1365_v13, %v1364_v44 }
  0xd5   : > { %1772 = vmatpush.bf16.msra.mxu2 %v2387_v30  ;;  %v1203_v35 = vunpack.c.l.b16 %v1179_v51  ;;  %1801 = vmatpush.bf16.msra.mxu3 %v2391_v32  ;;  %v1308_v30 = vld [vmem:[#allocation2 + $0x20] sm:$0xe] }
  0xd6   : > { %v1193_v29 = vsel %vm2998_vm9, %v1188_v20, %v1192_v22  ;;  %v2327_v20 = vrot.slane %v1310_v15, 9  ;;  %v1348_v24 = vsel %vm3055_vm12, %v2326_v18, %v1347_v45 }
  0xd7   : > { %v1204_v36 = vunpack.c.l.b16 %v1193_v29  ;;  %v1368_v25 = vunpack.c.l.b16 %v1348_v24  ;;  %v1307_v29 = vld [vmem:[#allocation2 + $0x18] sm:$0xe] }
  0xd8   : > { %v1352_v39 = vsel %vm3055_vm12, %v2327_v20, %v1351_v12  ;;  %v2324_v32 = vrot.slane %v1307_v29, 9 }
  0xd9   : > { %v1208_v50 = vpack.c.b16 %v1204_v36, %v1203_v35  ;;  %v1369_v51 = vunpack.c.l.b16 %v1352_v39  ;;  %v1339_v35 = vrot.slane %v3117_v9, 5  ;;  %v2325_v36 = vrot.slane %v1308_v30, 9 }
  0xdb   : > { %v3217_v31 = vpack.c.b16 %v1369_v51, %v1368_v25  ;;  %v1340_v54 = vsel %vm3055_vm12, %v2324_v32, %v1339_v35  ;;  %v2360_v25 = vld [vmem:[#allocation2 + $0x30] sm:$0xf]  ;;  %v2454_v51 = vld [vmem:[#allocation2 + $0x34] sm:$0xf0] }
  0xdc   : > { %v1366_v63 = vunpack.c.l.b16 %v1340_v54  ;;  %v2361_v32 = vor.u32 %v2454_v51, %v2360_v25 }
  0xe0   : > { %2315 = vmatmul.msk.bf16.gmra.mxu0 %vm597_vm8, %v1206_v41  ;;  %2319 = vmatmul.msk.bf16.gmra.mxu1 %vm597_vm8, %v1206_v41  ;;  %v2412_v41 = vld [vmem:[%s2884_s30 + $0x80] sm:$0xf] }
  0xe1   : > { %v2413_v26 = vor.u32 %v2461_v28, %v2412_v41  ;;  %v1343_v41 = vrot.slane %v3119_v10, 5  ;;  %v1355_v10 = vrot.slane %v3145_v5, 5 }
  0xe3   : > { %1939 = vmatpush.bf16.msra.mxu0 %v2413_v26  ;;  %v1344_v55 = vsel %vm3055_vm12, %v2325_v36, %v1343_v41 }
  0xe4   : > { %2297 = vmatmul.msk.bf16.gmra.mxu2 %vm597_vm8, %v2279_v52  ;;  %2301 = vmatmul.msk.bf16.gmra.mxu3 %vm597_vm8, %v2279_v52 }
  0xed   : > { %v3149_v8 = vpop.f32.mrf.mxu0  ;;  %v3151_v43 = vpop.f32.mrf.mxu1 }
  0xf0   : > { %2316 = vmatmul.msk.bf16.gmra.mxu0 %vm597_vm8, %v1207_v7  ;;  %2320 = vmatmul.msk.bf16.gmra.mxu1 %vm597_vm8, %v1207_v7  ;;  %v2352_v7 = vld [vmem:[#allocation2 + $0x10] sm:$0xf] }
  0xf1   : > { %v2353_v14 = vor.u32 %v2452_v11, %v2352_v7  ;;  %v2329_v11 = vrot.slane %v1312_v0, 9 }
  0xf3   : > { %v1360_v5 = vsel %vm3055_vm12, %v2329_v11, %v1359_v19 }
  0xf4   : > { %2298 = vmatmul.msk.bf16.gmra.mxu2 %vm597_vm8, %v2283_v16  ;;  %2302 = vmatmul.msk.bf16.gmra.mxu3 %vm597_vm8, %v2283_v16  ;;  %v1371_v15 = vunpack.c.l.b16 %v1360_v5  ;;  %v1840_v5 = vld [vmem:[#allocation2 + $0x18] sm:$0xe] }
  0xf5   : > { %v3162_v37 = vpop.f32.mrf.mxu0  ;;  %v3164_v21 = vpop.f32.mrf.mxu1 }
  0xf7   : > { %v3171_v33 = vpop.f32.mrf.mxu2  ;;  %v3173_v34 = vpop.f32.mrf.mxu3 }
  0xfd   : > { %v3179_v52 = vpop.f32.mrf.mxu0  ;;  %v3181_v53 = vpop.f32.mrf.mxu1 }
  0xff   : > { %v3183_v56 = vpop.f32.mrf.mxu2  ;;  %v3185_v57 = vpop.f32.mrf.mxu3 }
 0x100   : > { %2317 = vmatmul.msk.bf16.gmra.mxu0 %vm597_vm8, %v1208_v50  ;;  %2321 = vmatmul.msk.bf16.gmra.mxu1 %vm597_vm8, %v1208_v50 }
 0x104   : > { %2299 = vmatmul.msk.bf16.gmra.mxu2 %vm597_vm8, %v2287_v58  ;;  %2303 = vmatmul.msk.bf16.gmra.mxu3 %vm597_vm8, %v2287_v58  ;;  %v2356_v58 = vld [vmem:[#allocation2 + $0x20] sm:$0xf] }
 0x105   : > { %v3191_v61 = vpop.f32.mrf.mxu0  ;;  %v3193_v62 = vpop.f32.mrf.mxu1  ;;  %v2357_v27 = vor.u32 %v2453_v59, %v2356_v58 }
 0x107   : > { %v3197_v1 = vpop.f32.mrf.mxu2  ;;  %v3199_v2 = vpop.f32.mrf.mxu3 }
 0x10d   : > { %v873_v16 = vpop.f32.mrf.mxu0  ;;  %v902_v17 = vpop.f32.mrf.mxu1 }
 0x10f   : > { %v3207_v22 = vpop.f32.mrf.mxu2  ;;  %v3209_v23 = vpop.f32.mrf.mxu3 }
 0x110   : > { %2374 = vmatmul.msk.bf16.vlgmr.msrb.gmra.mxu0 %vm597_vm8, %v2353_v14  ;;  %2378 = vmatmul.msk.bf16.vlgmr.msrb.gmra.mxu1 %vm597_vm8, %v2353_v14 }
 0x114   : > { %2340 = vmatmul.msk.bf16.vlgmr.msrb.gmra.mxu2 %vm597_vm8, %v1372_v40  ;;  %2344 = vmatmul.msk.bf16.vlgmr.msrb.gmra.mxu3 %vm597_vm8, %v1372_v40 }
 0x115   : > { %v875_v28 = vpop.f32.mrf.mxu0  ;;  %v904_v42 = vpop.f32.mrf.mxu1 }
 0x117   : > { %v719_v26 = vpop.f32.mrf.mxu2  ;;  %v748_v47 = vpop.f32.mrf.mxu3 }
 0x118   : > { %v720_v48 = vadd.f32 %v719_v26, %v3149_v8  ;;  %v749_v50 = vadd.f32 %v748_v47, %v3151_v43  ;;  %v1367_v8 = vunpack.c.l.b16 %v1344_v55  ;;  %v1311_v43 = vld [vmem:[#allocation2 + $0x38] sm:$0xe]  ;;  %v1600_v47 = vld [vmem:[#allocation2 + $0x10] sm:$0xf] }
 0x119   : > { %v2328_v7 = vrot.slane %v1311_v43, 9  ;;  %v1617_v55 = vshrl.u32 %v1600_v47, 16  ;;  %v1620_v58 = vshll.u32 %v1600_v47, 16 }
 0x11a   : > { %v3229_v9 = vadd.f32 %v873_v16, %v720_v48  ;;  %v3231_v60 = vadd.f32 %v902_v17, %v749_v50  ;;  %v1373_v44 = vpack.c.b16 %v1367_v8, %v1366_v63  ;;  %v2364_v8 = vld [vmem:[#allocation2 + $0x40] sm:$0xf] }
 0x11b   : > { %v1356_v13 = vsel %vm3055_vm12, %v2328_v7, %v1355_v10  ;;  %v1601_v7 = vld [vmem:[#allocation2 + $0x14] sm:$0x1] }
 0x11c   : > { %v1370_v46 = vunpack.c.l.b16 %v1356_v13  ;;  %v1603_v13 = vld [vmem:[#allocation2 + $0x1c] sm:$0x1] }
 0x11d   : > { %v878_v3 = vpop.f32.mrf.mxu0  ;;  %v907_v4 = vpop.f32.mrf.mxu1  ;;  %v1869_v25 = vrot.slane %v1603_v13, 5 }
 0x11e   : > { %v3243_v16 = vpack.c.b16 %v1371_v15, %v1370_v46  ;;  %v1626_v46 = vshll.u32 %v1601_v7, 16 }
 0x11f   : > { %v721_v45 = vpop.f32.mrf.mxu2  ;;  %v750_v12 = vpop.f32.mrf.mxu3 }
 0x120   : > { %v722_v6 = vadd.f32 %v721_v45, %v3162_v37  ;;  %v751_v14 = vadd.f32 %v750_v12, %v3164_v21  ;;  %2375 = vmatmul.msk.bf16.gmra.mxu0 %vm597_vm8, %v2357_v27  ;;  %2379 = vmatmul.msk.bf16.gmra.mxu1 %vm597_vm8, %v2357_v27  ;;  %v2455_v27 = vld [vmem:[#allocation2 + $0x44] sm:$0xf0] }
 0x122   : > { %v3245_v17 = vadd.f32 %v875_v28, %v722_v6  ;;  %v3247_v18 = vadd.f32 %v904_v42, %v751_v14 }
 0x124   : > { %2341 = vmatmul.msk.bf16.gmra.mxu2 %vm597_vm8, %v1373_v44  ;;  %2345 = vmatmul.msk.bf16.gmra.mxu3 %vm597_vm8, %v1373_v44 }
 0x125   : > { %v880_v20 = vpop.f32.mrf.mxu0  ;;  %v909_v37 = vpop.f32.mrf.mxu1 }
 0x127   : > { %v724_v24 = vpop.f32.mrf.mxu2  ;;  %v753_v21 = vpop.f32.mrf.mxu3 }
 0x128   : > { %v725_v39 = vadd.f32 %v724_v24, %v3179_v52  ;;  %v754_v40 = vadd.f32 %v753_v21, %v3181_v53  ;;  %v1640_v24 = vshll.u32 %v1603_v13, 16 }
 0x12a   : > { %v3253_v29 = vadd.f32 %v878_v3, %v725_v39  ;;  %v3255_v30 = vadd.f32 %v907_v4, %v754_v40  ;;  %v1622_v3 = vrot.slane %v1620_v58, 5  ;;  %v2365_v4 = vor.u32 %v2455_v27, %v2364_v8 }
 0x12b   : > { %v1865_v39 = vrot.slane %v1601_v7, 5  ;;  %v2401_v40 = vrot.slane %v1840_v5, 9 }
 0x12d   : > { %v883_v35 = vpop.f32.mrf.mxu0  ;;  %v912_v36 = vpop.f32.mrf.mxu1 }
 0x12f   : > { %v726_v41 = vpop.f32.mrf.mxu2  ;;  %v755_v28 = vpop.f32.mrf.mxu3 }
 0x130   : > { %v727_v42 = vadd.f32 %v726_v41, %v3191_v61  ;;  %v756_v26 = vadd.f32 %v755_v28, %v3193_v62  ;;  %2376 = vmatmul.msk.bf16.gmra.mxu0 %vm597_vm8, %v2361_v32  ;;  %2380 = vmatmul.msk.bf16.gmra.mxu1 %vm597_vm8, %v2361_v32  ;;  %v1602_v61 = vld [vmem:[#allocation2 + $0x18] sm:$0xf]  ;;  %v1604_v32 = vld [vmem:[#allocation2 + $0x20] sm:$0xf] }
 0x131   : > { %v1631_v19 = vshrl.u32 %v1602_v61, 16  ;;  %v1634_v63 = vshll.u32 %v1602_v61, 16  ;;  %v1648_v61 = vshll.u32 %v1604_v32, 16 }
 0x132   : > { %v3261_v52 = vadd.f32 %v880_v20, %v727_v42  ;;  %v3263_v53 = vadd.f32 %v909_v37, %v756_v26  ;;  %v1642_v26 = vrot.slane %v1640_v24, 5 }
 0x133   : > { %v1633_v11 = vrot.slane %v1631_v19, 4  ;;  %v1636_v45 = vrot.slane %v1634_v63, 5 }
 0x134   : > { %2342 = vmatmul.msk.bf16.gmra.mxu2 %vm597_vm8, %v3217_v31  ;;  %2346 = vmatmul.msk.bf16.gmra.mxu3 %vm597_vm8, %v3217_v31  ;;  %v1619_v31 = vrot.slane %v1617_v55, 4 }
 0x135   : > { %v885_v48 = vpop.f32.mrf.mxu0  ;;  %v914_v50 = vpop.f32.mrf.mxu1  ;;  %v1637_v37 = vor.u32 %v1636_v45, %v1633_v11 }
 0x136   : > { %v1623_v14 = vor.u32 %v1622_v3, %v1619_v31  ;;  %v1650_v31 = vrot.slane %v1648_v61, 5 }
 0x137   : > { %v729_v54 = vpop.f32.mrf.mxu2  ;;  %v758_v62 = vpop.f32.mrf.mxu3  ;;  %v1638_v42 = vrot.slane %v1637_v37, 4 }
 0x138   : > { %v730_v59 = vadd.f32 %v729_v54, %v3171_v33  ;;  %v759_v10 = vadd.f32 %v758_v62, %v3173_v34  ;;  %v1839_v33 = vld [vmem:[#allocation2 + $0x10] sm:$0xe] }
 0x139   : > { %v2400_v21 = vrot.slane %v1839_v33, 9  ;;  %v1643_v8 = vsel %vm2998_vm9, %v1638_v42, %v1642_v26  ;;  %v1607_v33 = vld [vmem:[#allocation2 + $0x2c] sm:$0x1] }
 0x13a   : > { %v3271_v43 = vadd.f32 %v883_v35, %v730_v59  ;;  %v3273_v0 = vadd.f32 %v912_v36, %v759_v10  ;;  %v1606_v36 = vld [vmem:[#allocation2 + $0x28] sm:$0xf] }
 0x13b   : > { %v1866_v47 = vsel %vm3055_vm12, %v2400_v21, %v1865_v39  ;;  %v1659_v55 = vshrl.u32 %v1606_v36, 16  ;;  %v1662_v58 = vshll.u32 %v1606_v36, 16  ;;  %v1608_v36 = vld [vmem:[#allocation2 + $0x30] sm:$0xf] }
 0x13c   : > { %v1898_v10 = vunpack.c.l.b16 %v1866_v47 }
 0x13d   : > { %v888_v12 = vpop.f32.mrf.mxu0  ;;  %v917_v44 = vpop.f32.mrf.mxu1  ;;  %v1661_v7 = vrot.slane %v1659_v55, 4  ;;  %v1664_v11 = vrot.slane %v1662_v58, 5  ;;  %v1676_v55 = vshll.u32 %v1608_v36, 16 }
 0x13f   : > { %v731_v34 = vpop.f32.mrf.mxu2  ;;  %v760_v6 = vpop.f32.mrf.mxu3  ;;  %v1665_v24 = vor.u32 %v1664_v11, %v1661_v7  ;;  %v1678_v11 = vrot.slane %v1676_v55, 5 }
 0x140   : > { %v732_v15 = vadd.f32 %v731_v34, %v3183_v56  ;;  %v761_v20 = vadd.f32 %v760_v6, %v3185_v57  ;;  %2377 = vmatmul.msk.bf16.gmra.mxu0 %vm597_vm8, %v2365_v4  ;;  %2381 = vmatmul.msk.bf16.gmra.mxu1 %vm597_vm8, %v2365_v4  ;;  %v1624_v56 = vrot.slane %v1623_v14, 4  ;;  %v1628_v57 = vrot.slane %v1626_v46, 5  ;;  %v1841_v14 = vld [vmem:[#allocation2 + $0x20] sm:$0xe]  ;;  %v1842_v46 = vld [vmem:[#allocation2 + $0x28] sm:$0xe] }
 0x141   : > { %v1666_v47 = vrot.slane %v1665_v24, 4 }
 0x142   : > { %v3279_v51 = vadd.f32 %v885_v48, %v732_v15  ;;  %v3281_v35 = vadd.f32 %v914_v50, %v761_v20  ;;  %v1870_v48 = vsel %vm3055_vm12, %v2401_v40, %v1869_v25  ;;  %v1645_v50 = vshrl.u32 %v1604_v32, 16 }
 0x143   : > { %v1899_v19 = vunpack.c.l.b16 %v1870_v48  ;;  %v1629_v63 = vsel %vm2998_vm9, %v1624_v56, %v1628_v57  ;;  %v2402_v40 = vrot.slane %v1841_v14, 9  ;;  %v2403_v32 = vrot.slane %v1842_v46, 9  ;;  %v1609_v14 = vld [vmem:[#allocation2 + $0x34] sm:$0x1]  ;;  %v1611_v46 = vld [vmem:[#allocation2 + $0x3c] sm:$0x1] }
 0x144   : > { %2343 = vmatmul.msk.bf16.gmra.mxu2 %vm597_vm8, %v3243_v16  ;;  %2347 = vmatmul.msk.bf16.gmra.mxu3 %vm597_vm8, %v3243_v16  ;;  %v1647_v27 = vrot.slane %v1645_v50, 4  ;;  %v1731_v45 = vunpack.c.l.b16 %v1629_v63  ;;  %v1877_v56 = vrot.slane %v1607_v33, 5  ;;  %v1610_v50 = vld [vmem:[#allocation2 + $0x38] sm:$0xf] }
 0x145   : > { %v890_v41 = vpop.f32.mrf.mxu0  ;;  %v919_v28 = vpop.f32.mrf.mxu1  ;;  %v1906_v13 = vpack.c.b16 %v1899_v19, %v1898_v10  ;;  %v1687_v58 = vshrl.u32 %v1610_v50, 16 }
 0x146   : > { %v1651_v6 = vor.u32 %v1650_v31, %v1647_v27 }
 0x147   : > { %v734_v54 = vpop.f32.mrf.mxu2  ;;  %v763_v62 = vpop.f32.mrf.mxu3 }
 0x148   : > { %v735_v16 = vadd.f32 %v734_v54, %v3197_v1  ;;  %v764_v59 = vadd.f32 %v763_v62, %v3199_v2  ;;  %v1732_v1 = vunpack.c.l.b16 %v1643_v8  ;;  %v1605_v2 = vld [vmem:[#allocation2 + $0x24] sm:$0x1]  ;;  %v1652_v57 = vrot.slane %v1651_v6, 4 }
 0x149   : > { %v1654_v37 = vshll.u32 %v1605_v2, 16  ;;  %v1873_v25 = vrot.slane %v1605_v2, 5  ;;  %v1878_v62 = vsel %vm3055_vm12, %v2403_v32, %v1877_v56  ;;  %v1881_v32 = vrot.slane %v1609_v14, 5 }
 0x14a   : > { %v3297_v3 = vadd.f32 %v888_v12, %v735_v16  ;;  %v3299_v4 = vadd.f32 %v917_v44, %v764_v59  ;;  %v1668_v12 = vshll.u32 %v1607_v33, 16  ;;  %v1739_v39 = vpack.c.b16 %v1732_v1, %v1731_v45 }
 0x14b   : > { %v1656_v26 = vrot.slane %v1654_v37, 5  ;;  %v1874_v54 = vsel %vm3055_vm12, %v2402_v40, %v1873_v25  ;;  %v1690_v16 = vshll.u32 %v1610_v50, 16  ;;  %v1901_v31 = vunpack.c.l.b16 %v1878_v62 }
 0x14c   : > { %v1670_v48 = vrot.slane %v1668_v12, 5  ;;  %v1900_v27 = vunpack.c.l.b16 %v1874_v54  ;;  %v1689_v45 = vrot.slane %v1687_v58, 4  ;;  %v1682_v12 = vshll.u32 %v1609_v14, 16 }
 0x14d   : > { %v1240_v5 = vpop.f32.mrf.mxu0  ;;  %v1269_v34 = vpop.f32.mrf.mxu1  ;;  %v1692_v1 = vrot.slane %v1690_v16, 5  ;;  %v1614_v16 = vld [vmem:[#allocation2 + $0x48] sm:$0xf] }
 0x14e   : > { %v1671_v19 = vsel %vm2998_vm9, %v1666_v47, %v1670_v48  ;;  %v1684_v47 = vrot.slane %v1682_v12, 5 }
 0x14f   : > { %v736_v15 = vpop.f32.mrf.mxu2  ;;  %v765_v20 = vpop.f32.mrf.mxu3  ;;  %v1734_v6 = vunpack.c.l.b16 %v1671_v19 }
 0x150   : > { %v737_v44 = vadd.f32 %v736_v15, %v3207_v22  ;;  %v766_v21 = vadd.f32 %v765_v20, %v3209_v23  ;;  %2418 = vmatmul.msk.bf16.vlgmr.msra.gmra.mxu0 %vm597_vm8, %v1906_v13  ;;  %2422 = vmatmul.msk.bf16.vlgmr.msra.gmra.mxu1 %vm597_vm8, %v1906_v13  ;;  %v1907_v15 = vpack.c.b16 %v1901_v31, %v1900_v27  ;;  %v1843_v20 = vld [vmem:[#allocation2 + $0x30] sm:$0xe] }
 0x152   : > { %v3305_v42 = vadd.f32 %v890_v41, %v737_v44  ;;  %v3307_v22 = vadd.f32 %v919_v28, %v766_v21  ;;  %v1673_v41 = vshrl.u32 %v1608_v36, 16  ;;  %v1657_v28 = vsel %vm2998_vm9, %v1652_v57, %v1656_v26 }
 0x153   : > { %v1733_v33 = vunpack.c.l.b16 %v1657_v28  ;;  %v1693_v44 = vor.u32 %v1692_v1, %v1689_v45  ;;  %v1696_v21 = vshll.u32 %v1611_v46, 16  ;;  %v1885_v36 = vrot.slane %v1611_v46, 5 }
 0x154   : > { %2392 = vmatmul.msk.bf16.vlgmr.msra.gmra.mxu2 %vm597_vm8, %v1739_v39  ;;  %2396 = vmatmul.msk.bf16.vlgmr.msra.gmra.mxu3 %vm597_vm8, %v1739_v39  ;;  %v1675_v7 = vrot.slane %v1673_v41, 4  ;;  %v1612_v41 = vld [vmem:[#allocation2 + $0x40] sm:$0xf] }
 0x155   : > { %v1242_v23 = vpop.f32.mrf.mxu0  ;;  %v1271_v61 = vpop.f32.mrf.mxu1  ;;  %v1740_v25 = vpack.c.b16 %v1734_v6, %v1733_v33  ;;  %v1694_v48 = vrot.slane %v1693_v44, 4  ;;  %v1698_v50 = vrot.slane %v1696_v21, 5  ;;  %v1615_v21 = vld [vmem:[#allocation2 + $0x4c] sm:$0x1] }
 0x156   : > { %v1679_v24 = vor.u32 %v1678_v11, %v1675_v7  ;;  %v1715_v7 = vshrl.u32 %v1614_v16, 16  ;;  %v1718_v11 = vshll.u32 %v1614_v16, 16 }
 0x157   : > { %v1001_v59 = vpop.f32.mrf.mxu2  ;;  %v1030_v10 = vpop.f32.mrf.mxu3 }
 0x158   : > { %v1050_v63 = vadd.f32 %v1001_v59, %v3229_v9  ;;  %v1051_v8 = vadd.f32 %v1030_v10, %v3231_v60  ;;  %v1844_v60 = vld [vmem:[#allocation2 + $0x38] sm:$0xe]  ;;  %v1680_v26 = vrot.slane %v1679_v24, 4  ;;  %v1717_v24 = vrot.slane %v1715_v7, 4 }
 0x159   : > { %v2405_v57 = vrot.slane %v1844_v60, 9  ;;  %v1720_v60 = vrot.slane %v1718_v11, 5 }
 0x15a   : > { %v3321_v13 = vadd.f32 %v1240_v5, %v1050_v63  ;;  %v3323_v2 = vadd.f32 %v1269_v34, %v1051_v8  ;;  %v2404_v5 = vrot.slane %v1843_v20, 9  ;;  %v1701_v63 = vshrl.u32 %v1612_v41, 16  ;;  %v1613_v20 = vld [vmem:[#allocation2 + $0x44] sm:$0x1] }
 0x15b   : > { %v1704_v8 = vshll.u32 %v1612_v41, 16 }
 0x15c   : > { %v1703_v14 = vrot.slane %v1701_v63, 4 }
 0x15d   : > { %v1245_v37 = vpop.f32.mrf.mxu0  ;;  %v1274_v9 = vpop.f32.mrf.mxu1  ;;  %v1706_v46 = vrot.slane %v1704_v8, 5 }
 0x15f   : > { %v1003_v39 = vpop.f32.mrf.mxu2  ;;  %v1032_v40 = vpop.f32.mrf.mxu3 }
 0x160   : > { %v1052_v34 = vadd.f32 %v1003_v39, %v3245_v17  ;;  %v1053_v56 = vadd.f32 %v1032_v40, %v3247_v18  ;;  %2419 = vmatmul.msk.bf16.gmra.mxu0 %vm597_vm8, %v1907_v15  ;;  %2423 = vmatmul.msk.bf16.gmra.mxu1 %vm597_vm8, %v1907_v15  ;;  %v1882_v17 = vsel %vm3055_vm12, %v2404_v5, %v1881_v32  ;;  %v1846_v39 = vld [vmem:[#allocation2 + $0x48] sm:$0xe]  ;;  %v1710_v5 = vshll.u32 %v1613_v20, 16 }
 0x161   : > { %v1886_v18 = vsel %vm3055_vm12, %v2405_v57, %v1885_v36  ;;  %v1902_v28 = vunpack.c.l.b16 %v1882_v17  ;;  %v1889_v36 = vrot.slane %v1613_v20, 5 }
 0x162   : > { %v3329_v54 = vadd.f32 %v1242_v23, %v1052_v34  ;;  %v3331_v62 = vadd.f32 %v1271_v61, %v1053_v56  ;;  %v1685_v23 = vsel %vm2998_vm9, %v1680_v26, %v1684_v47  ;;  %v1699_v61 = vsel %vm2998_vm9, %v1694_v48, %v1698_v50 }
 0x163   : > { %v1903_v19 = vunpack.c.l.b16 %v1886_v18  ;;  %v1735_v33 = vunpack.c.l.b16 %v1685_v23  ;;  %v1736_v6 = vunpack.c.l.b16 %v1699_v61  ;;  %v1721_v34 = vor.u32 %v1720_v60, %v1717_v24 }
 0x164   : > { %2393 = vmatmul.msk.bf16.gmra.mxu2 %vm597_vm8, %v1740_v25  ;;  %2397 = vmatmul.msk.bf16.gmra.mxu3 %vm597_vm8, %v1740_v25  ;;  %v1724_v56 = vshll.u32 %v1615_v21, 16  ;;  %v2407_v26 = vrot.slane %v1846_v39, 9  ;;  %v1893_v47 = vrot.slane %v1615_v21, 5 }
 0x165   : > { %v1247_v55 = vpop.f32.mrf.mxu0  ;;  %v1276_v58 = vpop.f32.mrf.mxu1  ;;  %v1908_v15 = vpack.c.b16 %v1903_v19, %v1902_v28  ;;  %v1741_v25 = vpack.c.b16 %v1736_v6, %v1735_v33  ;;  %v1722_v41 = vrot.slane %v1721_v34, 4 }
 0x166   : > { %v1726_v16 = vrot.slane %v1724_v56, 5  ;;  %v1894_v61 = vsel %vm3055_vm12, %v2407_v26, %v1893_v47 }
 0x167   : > { %v1006_v59 = vpop.f32.mrf.mxu2  ;;  %v1035_v10 = vpop.f32.mrf.mxu3  ;;  %v1905_v19 = vunpack.c.l.b16 %v1894_v61 }
 0x168   : > { %v1054_v27 = vadd.f32 %v1006_v59, %v3253_v29  ;;  %v1055_v31 = vadd.f32 %v1035_v10, %v3255_v30  ;;  %v1845_v29 = vld [vmem:[#allocation2 + $0x40] sm:$0xe]  ;;  %v1727_v8 = vsel %vm2998_vm9, %v1722_v41, %v1726_v16 }
 0x169   : > { %v2406_v57 = vrot.slane %v1845_v29, 9  ;;  %v1738_v7 = vunpack.c.l.b16 %v1727_v8 }
 0x16a   : > { %v3345_v45 = vadd.f32 %v1245_v37, %v1054_v27  ;;  %v3347_v1 = vadd.f32 %v1274_v9, %v1055_v31  ;;  %v1707_v37 = vor.u32 %v1706_v46, %v1703_v14 }
 0x16b   : > { %v1890_v23 = vsel %vm3055_vm12, %v2406_v57, %v1889_v36 }
 0x16c   : > { %v1904_v28 = vunpack.c.l.b16 %v1890_v23 }
 0x16d   : > { %v1250_v12 = vpop.f32.mrf.mxu0  ;;  %v1279_v44 = vpop.f32.mrf.mxu1 }
 0x16e   : > { %v1909_v11 = vpack.c.b16 %v1905_v19, %v1904_v28 }
 0x16f   : > { %v1008_v30 = vpop.f32.mrf.mxu2  ;;  %v1037_v40 = vpop.f32.mrf.mxu3 }
 0x170   : > { %v1056_v9 = vadd.f32 %v1008_v30, %v3261_v52  ;;  %v1057_v32 = vadd.f32 %v1037_v40, %v3263_v53  ;;  %2420 = vmatmul.msk.bf16.gmra.mxu0 %vm597_vm8, %v1908_v15  ;;  %2424 = vmatmul.msk.bf16.gmra.mxu1 %vm597_vm8, %v1908_v15  ;;  %v1708_v52 = vrot.slane %v1707_v37, 4  ;;  %v1712_v53 = vrot.slane %v1710_v5, 5 }
 0x172   : > { %v3353_v48 = vadd.f32 %v1247_v55, %v1056_v9  ;;  %v3355_v50 = vadd.f32 %v1276_v58, %v1057_v32  ;;  %v1713_v63 = vsel %vm2998_vm9, %v1708_v52, %v1712_v53 }
 0x173   : > { %v1737_v38 = vunpack.c.l.b16 %v1713_v63 }
 0x174   : > { %2394 = vmatmul.msk.bf16.gmra.mxu2 %vm597_vm8, %v1741_v25  ;;  %2398 = vmatmul.msk.bf16.gmra.mxu3 %vm597_vm8, %v1741_v25 }
 0x175   : > { %v1252_v17 = vpop.f32.mrf.mxu0  ;;  %v1281_v18 = vpop.f32.mrf.mxu1  ;;  %v1742_v15 = vpack.c.b16 %v1738_v7, %v1737_v38 }
 0x177   : > { %v1011_v55 = vpop.f32.mrf.mxu2  ;;  %v1040_v59 = vpop.f32.mrf.mxu3 }
 0x178   : > { %v1058_v58 = vadd.f32 %v1011_v55, %v3271_v43  ;;  %v1059_v10 = vadd.f32 %v1040_v59, %v3273_v0 }
 0x17a   : > { %v3369_v27 = vadd.f32 %v1250_v12, %v1058_v58  ;;  %v3371_v31 = vadd.f32 %v1279_v44, %v1059_v10 }
 0x17d   : > { %v1255_v33 = vpop.f32.mrf.mxu0  ;;  %v1284_v6 = vpop.f32.mrf.mxu1 }
 0x17f   : > { %v1013_v43 = vpop.f32.mrf.mxu2  ;;  %v1042_v14 = vpop.f32.mrf.mxu3 }
 0x180   : > { %v1060_v0 = vadd.f32 %v1013_v43, %v3279_v51  ;;  %v1061_v46 = vadd.f32 %v1042_v14, %v3281_v35  ;;  %2421 = vmatmul.msk.bf16.gmra.mxu0 %vm597_vm8, %v1909_v11  ;;  %2425 = vmatmul.msk.bf16.gmra.mxu1 %vm597_vm8, %v1909_v11 }
 0x182   : > { %v3377_v49 = vadd.f32 %v1252_v17, %v1060_v0  ;;  %v3379_v20 = vadd.f32 %v1281_v18, %v1061_v46  ;;  %v2006_v46 = vld [vmem:[%s2892_s27] sm:$0x3] }
 0x184   : > { %2395 = vmatmul.msk.bf16.gmra.mxu2 %vm597_vm8, %v1742_v15  ;;  %2399 = vmatmul.msk.bf16.gmra.mxu3 %vm597_vm8, %v1742_v15 }
 0x185   : > { %v1257_v24 = vpop.f32.mrf.mxu0  ;;  %v1286_v60 = vpop.f32.mrf.mxu1 }
 0x187   : > { %v1016_v12 = vpop.f32.mrf.mxu2  ;;  %v1045_v44 = vpop.f32.mrf.mxu3 }
 0x188   : > { %v1062_v51 = vadd.f32 %v1016_v12, %v3297_v3  ;;  %v1063_v35 = vadd.f32 %v1045_v44, %v3299_v4 }
 0x18a   : > { %v3385_v21 = vadd.f32 %v1255_v33, %v1062_v51  ;;  %v3387_v29 = vadd.f32 %v1284_v6, %v1063_v35 }
 0x18d   : > { %v1535_v39 = vpop.f32.mrf.mxu0  ;;  %v1564_v30 = vpop.f32.mrf.mxu1 }
 0x18f   : > { %v1018_v40 = vpop.f32.mrf.mxu2  ;;  %v1047_v25 = vpop.f32.mrf.mxu3 }
 0x190   : > { %v1064_v37 = vadd.f32 %v1018_v40, %v3305_v42  ;;  %v1065_v5 = vadd.f32 %v1047_v25, %v3307_v22  ;;  %v3442_v40 = vperm.slane %v2006_v46, 0 }
 0x192   : > { %v3391_v9 = vadd.f32 %v1257_v24, %v1064_v37  ;;  %v3393_v32 = vadd.f32 %v1286_v60, %v1065_v5  ;;  %v3444_v37 = vperm.slane %v2006_v46, 1 }
 0x195   : > { %v1537_v34 = vpop.f32.mrf.mxu0  ;;  %v1566_v3 = vpop.f32.mrf.mxu1 }
 0x197   : > { %v1407_v56 = vpop.f32.mrf.mxu2  ;;  %v1436_v4 = vpop.f32.mrf.mxu3 }
 0x198   : > { %v1456_v14 = vadd.f32 %v1407_v56, %v3321_v13  ;;  %v1457_v0 = vadd.f32 %v1436_v4, %v3323_v2 }
 0x19a   : > { %v1584_v60 = vadd.f32 %v1535_v39, %v1456_v14  ;;  %v1585_v12 = vadd.f32 %v1564_v30, %v1457_v0 }
 0x19d   : > { %v3395_v57 = vpop.f32.mrf.mxu0  ;;  %v3397_v36 = vpop.f32.mrf.mxu1 }
 0x19f   : > { %v1409_v26 = vpop.f32.mrf.mxu2  ;;  %v1438_v47 = vpop.f32.mrf.mxu3 }
 0x1a0   : > { %v1458_v5 = vadd.f32 %v1409_v26, %v3329_v54  ;;  %v1459_v13 = vadd.f32 %v1438_v47, %v3331_v62 }
 0x1a2   : > { %v1586_v30 = vadd.f32 %v1537_v34, %v1458_v5  ;;  %v1587_v14 = vadd.f32 %v1566_v3, %v1459_v13 }
 0x1a5   : > { %v3399_v52 = vpop.f32.mrf.mxu0  ;;  %v3401_v53 = vpop.f32.mrf.mxu1 }
 0x1a7   : > { %v1412_v42 = vpop.f32.mrf.mxu2  ;;  %v1441_v22 = vpop.f32.mrf.mxu3 }
 0x1a8   : > { %v1460_v62 = vadd.f32 %v1412_v42, %v3345_v45  ;;  %v1461_v26 = vadd.f32 %v1441_v22, %v3347_v1 }
 0x1aa   : > { %v1588_v34 = vadd.f32 %v3395_v57, %v1460_v62  ;;  %v1589_v3 = vadd.f32 %v3397_v36, %v1461_v26 }
 0x1ad   : > { %v3403_v17 = vpop.f32.mrf.mxu0  ;;  %v3405_v18 = vpop.f32.mrf.mxu1 }
 0x1af   : > { %v3407_v41 = vpop.f32.mrf.mxu2  ;;  %v3409_v16 = vpop.f32.mrf.mxu3 }
 0x1b0   : > { %v1462_v22 = vadd.f32 %v3407_v41, %v3353_v48 }
 0x1b5   : > { %v3411_v23 = vpop.f32.mrf.mxu0  ;;  %v3413_v61 = vpop.f32.mrf.mxu1 }
 0x1b7   : > { %v3415_v55 = vpop.f32.mrf.mxu2  ;;  %v3417_v59 = vpop.f32.mrf.mxu3 }
 0x1bd   : > { %v3419_v58 = vpop.f32.mrf.mxu0  ;;  %v3421_v10 = vpop.f32.mrf.mxu1 }
 0x1bf   : > { %v3423_v28 = vpop.f32.mrf.mxu2  ;;  %v3425_v19 = vpop.f32.mrf.mxu3 }
 0x1c5   : > { %v3427_v63 = vpop.f32.mrf.mxu0  ;;  %v3429_v8 = vpop.f32.mrf.mxu1 }
 0x1c7   : > { %v3431_v38 = vpop.f32.mrf.mxu2  ;;  %v3433_v7 = vpop.f32.mrf.mxu3 }
 0x1cd   : > { %v1941_v11 = vpop.f32.mrf.mxu0  ;;  %v1970_v33 = vpop.f32.mrf.mxu1 }
 0x1cf   : > { %v3435_v6 = vpop.f32.mrf.mxu2  ;;  %v3437_v43 = vpop.f32.mrf.mxu3 }
 0x1d5   : > { %v1943_v15 = vpop.f32.mrf.mxu0  ;;  %v1972_v24 = vpop.f32.mrf.mxu1 }
 0x1d7   : > { %v1774_v44 = vpop.f32.mrf.mxu2  ;;  %v1803_v51 = vpop.f32.mrf.mxu3 }
 0x1d8   : > { %v1823_v35 = vadd.f32 %v1774_v44, %v1584_v60  ;;  %v1824_v25 = vadd.f32 %v1803_v51, %v1585_v12 }
 0x1da   : > { %v1990_v2 = vadd.f32 %v1941_v11, %v1823_v35  ;;  %v1991_v56 = vadd.f32 %v1970_v33, %v1824_v25 }
 0x1dc   : > { %v2012_v4 = vadd.f32 %v3442_v40, %v1990_v2  ;;  %v2013_v39 = vadd.f32 %v3444_v37, %v1991_v56  ;;  %v1590_v2 = vadd.f32 %v3399_v52, %v1462_v22  ;;  %v1470_v22 = vadd.f32 %v3435_v6, %v3391_v9 }
 0x1dd   : > { %v1946_v0 = vpop.f32.mrf.mxu0  ;;  %v1975_v60 = vpop.f32.mrf.mxu1 }
 0x1de   : > { %2028 = vst [vmem:[%s2894_s29] sm:$0xff] %v2012_v4 }
 0x1df   : > { %2029 = vst [vmem:[%s2894_s29 + $0x8] sm:$0xff] %v2013_v39  ;;  %v1776_v46 = vpop.f32.mrf.mxu2  ;;  %v1805_v12 = vpop.f32.mrf.mxu3 }
 0x1e0   : > { %v1825_v44 = vadd.f32 %v1776_v46, %v1586_v30  ;;  %v1826_v54 = vadd.f32 %v1805_v12, %v1587_v14 }
 0x1e2   : > { %v1992_v47 = vadd.f32 %v1943_v15, %v1825_v44  ;;  %v1993_v11 = vadd.f32 %v1972_v24, %v1826_v54  ;;  %v1463_v15 = vadd.f32 %v3409_v16, %v3355_v50  ;;  %v1464_v50 = vadd.f32 %v3415_v55, %v3369_v27 }
 0x1e3   : > { %v1465_v16 = vadd.f32 %v3417_v59, %v3371_v31  ;;  %v1466_v59 = vadd.f32 %v3423_v28, %v3377_v49  ;;  %v1467_v54 = vadd.f32 %v3425_v19, %v3379_v20  ;;  %v1468_v19 = vadd.f32 %v3431_v38, %v3385_v21 }
 0x1e4   : > { %v2014_v33 = vadd.f32 %v3442_v40, %v1992_v47  ;;  %v2015_v51 = vadd.f32 %v3444_v37, %v1993_v11  ;;  %v1591_v56 = vadd.f32 %v3401_v53, %v1463_v15  ;;  %v1592_v46 = vadd.f32 %v3403_v17, %v1464_v50 }
 0x1e5   : > { %v1948_v42 = vpop.f32.mrf.mxu0  ;;  %v1977_v1 = vpop.f32.mrf.mxu1  ;;  %v1593_v12 = vadd.f32 %v3405_v18, %v1465_v16  ;;  %v1471_v15 = vadd.f32 %v3437_v43, %v3393_v32 }
 0x1e6   : > { %2030 = vst [vmem:[%s2894_s29 + $0x10] sm:$0xff] %v2014_v33  ;;  %v1594_v33 = vadd.f32 %v3411_v23, %v1466_v59 }
 0x1e7   : > { %2031 = vst [vmem:[%s2894_s29 + $0x18] sm:$0xff] %v2015_v51  ;;  %v1779_v35 = vpop.f32.mrf.mxu2  ;;  %v1808_v25 = vpop.f32.mrf.mxu3  ;;  %v1595_v51 = vadd.f32 %v3413_v61, %v1467_v54 }
 0x1e8   : > { %v1827_v5 = vadd.f32 %v1779_v35, %v1588_v34  ;;  %v1828_v45 = vadd.f32 %v1808_v25, %v1589_v3  ;;  %v1469_v3 = vadd.f32 %v3433_v7, %v3387_v29 }
 0x1ea   : > { %v1994_v24 = vadd.f32 %v1946_v0, %v1827_v5  ;;  %v1995_v13 = vadd.f32 %v1975_v60, %v1828_v45 }
 0x1ec   : > { %v2016_v57 = vadd.f32 %v3442_v40, %v1994_v24  ;;  %v2017_v36 = vadd.f32 %v3444_v37, %v1995_v13 }
 0x1ed   : > { %v1951_v0 = vpop.f32.mrf.mxu0  ;;  %v1980_v60 = vpop.f32.mrf.mxu1 }
 0x1ee   : > { %2032 = vst [vmem:[%s2894_s29 + $0x20] sm:$0xff] %v2016_v57  ;;  %v1598_v57 = vadd.f32 %v3427_v63, %v1470_v22 }
 0x1ef   : > { %2033 = vst [vmem:[%s2894_s29 + $0x28] sm:$0xff] %v2017_v36  ;;  %v1781_v4 = vpop.f32.mrf.mxu2  ;;  %v1810_v39 = vpop.f32.mrf.mxu3  ;;  %v1599_v36 = vadd.f32 %v3429_v8, %v1471_v15 }
 0x1f0   : > { %v1829_v48 = vadd.f32 %v1781_v4, %v1590_v2  ;;  %v1830_v41 = vadd.f32 %v1810_v39, %v1591_v56 }
 0x1f2   : > { %v1996_v30 = vadd.f32 %v1948_v42, %v1829_v48  ;;  %v1997_v14 = vadd.f32 %v1977_v1, %v1830_v41  ;;  %v1596_v42 = vadd.f32 %v3419_v58, %v1468_v19  ;;  %v1597_v1 = vadd.f32 %v3421_v10, %v1469_v3 }
 0x1f4   : > { %v2018_v52 = vadd.f32 %v3442_v40, %v1996_v30  ;;  %v2019_v53 = vadd.f32 %v3444_v37, %v1997_v14 }
 0x1f5   : > { %v1953_v11 = vpop.f32.mrf.mxu0  ;;  %v1982_v18 = vpop.f32.mrf.mxu1 }
 0x1f6   : > { %2034 = vst [vmem:[%s2894_s29 + $0x30] sm:$0xff] %v2018_v52 }
 0x1f7   : > { %2035 = vst [vmem:[%s2894_s29 + $0x38] sm:$0xff] %v2019_v53  ;;  %v1784_v27 = vpop.f32.mrf.mxu2  ;;  %v1813_v55 = vpop.f32.mrf.mxu3 }
 0x1f8   : > { %v1831_v44 = vadd.f32 %v1784_v27, %v1592_v46  ;;  %v1832_v31 = vadd.f32 %v1813_v55, %v1593_v12 }
 0x1fa   : > { %v1998_v62 = vadd.f32 %v1951_v0, %v1831_v44  ;;  %v1999_v26 = vadd.f32 %v1980_v60, %v1832_v31 }
 0x1fc   : > { %v2020_v47 = vadd.f32 %v3442_v40, %v1998_v62  ;;  %v2021_v17 = vadd.f32 %v3444_v37, %v1999_v26 }
 0x1fd   : > { %v1956_v61 = vpop.f32.mrf.mxu0  ;;  %v1985_v45 = vpop.f32.mrf.mxu1 }
 0x1fe   : > { %2036 = vst [vmem:[%s2894_s29 + $0x40] sm:$0xff] %v2020_v47 }
 0x1ff   : > { %2037 = vst [vmem:[%s2894_s29 + $0x48] sm:$0xff] %v2021_v17  ;;  %v1786_v49 = vpop.f32.mrf.mxu2  ;;  %v1815_v28 = vpop.f32.mrf.mxu3 }
 0x200   : > { %v1833_v34 = vadd.f32 %v1786_v49, %v1594_v33  ;;  %v1834_v20 = vadd.f32 %v1815_v28, %v1595_v51 }
 0x202   : > { %v2000_v35 = vadd.f32 %v1953_v11, %v1833_v34  ;;  %v2001_v25 = vadd.f32 %v1982_v18, %v1834_v20 }
 0x204   : > { %v2022_v5 = vadd.f32 %v3442_v40, %v2000_v35  ;;  %v2023_v23 = vadd.f32 %v3444_v37, %v2001_v25 }
 0x205   : > { %v1958_v2 = vpop.f32.mrf.mxu0  ;;  %v1987_v56 = vpop.f32.mrf.mxu1 }
 0x206   : > { %2038 = vst [vmem:[%s2894_s29 + $0x50] sm:$0xff] %v2022_v5 }
 0x207   : > { %2039 = vst [vmem:[%s2894_s29 + $0x58] sm:$0xff] %v2023_v23  ;;  %v1789_v21 = vpop.f32.mrf.mxu2  ;;  %v1818_v38 = vpop.f32.mrf.mxu3 }
 0x208   : > { %v1835_v29 = vadd.f32 %v1789_v21, %v1596_v42  ;;  %v1836_v7 = vadd.f32 %v1818_v38, %v1597_v1 }
 0x20a   : > { %v2002_v24 = vadd.f32 %v1956_v61, %v1835_v29  ;;  %v2003_v13 = vadd.f32 %v1985_v45, %v1836_v7 }
 0x20c   : > { %v2024_v58 = vadd.f32 %v3442_v40, %v2002_v24  ;;  %v2025_v10 = vadd.f32 %v3444_v37, %v2003_v13 }
 0x20e   : > { %2040 = vst [vmem:[%s2894_s29 + $0x60] sm:$0xff] %v2024_v58 }
 0x20f   : > { %2041 = vst [vmem:[%s2894_s29 + $0x68] sm:$0xff] %v2025_v10  ;;  %v1791_v9 = vpop.f32.mrf.mxu2  ;;  %v1820_v32 = vpop.f32.mrf.mxu3 }
 0x210   : > { %v1837_v6 = vadd.f32 %v1791_v9, %v1598_v57  ;;  %v1838_v43 = vadd.f32 %v1820_v32, %v1599_v36 }
 0x212   : > { %v2004_v63 = vadd.f32 %v1958_v2, %v1837_v6  ;;  %v2005_v4 = vadd.f32 %v1987_v56, %v1838_v43 }
 0x214   : > { %v2026_v8 = vadd.f32 %v3442_v40, %v2004_v63  ;;  %v2027_v39 = vadd.f32 %v3444_v37, %v2005_v4 }
 0x216   : > { %2042 = vst [vmem:[%s2894_s29 + $0x70] sm:$0xff] %v2026_v8 }
 0x217   : > { %2043 = vst [vmem:[%s2894_s29 + $0x78] sm:$0xff] %v2027_v39 }
 0x218   : > { %2671 = shalt.err (!%p2668_p4)
}
 0x219   : > { %s2739_s28 = smov 256   ;;  %s2740_s30 = smov 512  }
 0x21a   : > { %s2741_s1 = smov 16  }
 0x21b   : > { %2475 = dma.vmem_to_hbm [thread:$0]  (%p2844_p0), %s2060_s15, 2048, %s2062_s7, %s2045_s8, %s2739_s28, %s2740_s30, %s2741_s1  }
 0x21c PF: > { %s2076_s6 = sand.u32 1, %s2710_s12   ;;  %p2489_p5 = pnand %p2184_p3, %p2848_p2 }
 0x21d   : > { %s2077_s27 = scalar_lea.sflag [#allocation5], %s2076_s6 }
 0x21e   : > { %p2490_p1 = pneg %p2489_p5 }
 0x220   : > { %2705 = dma.done.wait (%p2490_p1), %s2077_s27, 2048  }
 0x221   : > { %2707 = vsyncadd (%p2490_p1), %s2077_s27, 4294965248  ;;  %s20_s17 = sadd.s32 1, %s2730_s17   ;;  %s3574_s12 = smov %s2714_s13 }
 0x222   : > { %p17_p6 = scmp.ge.s32.totalorder %s20_s17, 4   ;;  %s3575_s13 = smov %s2718_s14 }
 0x223   : > { %s3576_s14 = smov %s2810_s24  ;;  %s3577_s15 = smov %s2726_s16 }
 0x224   : > { %s3578_s16 = smov %s3580_s18  ;;  %19 = sbr.rel (!%p17_p6) target bundleno = 10 (0xa), region = 109 }
 0x229   :  { %2083 = vsyncpa [#allocation4], 1 }
 0x22a   :  { %2085 = vsyncpa [#allocation4 + $0x1], 1 }
 0x22b   :  { %2086 = vsyncpa [#allocation7], 1 }
 0x22c   :  { %2088 = vsyncpa [#allocation7 + $0x1], 1 }
 0x22d   :  { %2089 = vsyncpa [#allocation5], 1 }
 0x22e   :  { %2091 = vsyncpa [#allocation5 + $0x1], 1 }

</bundles_post_ra>
